<compile_context>
chip_gen: v5e
topology: v5e:2x2
jax: 0.10.0
libtpu: 0.0.40
codegen_flags: <defaults>
</compile_context>

<pallas_src>
import functools
import math

import jax
import jax.numpy as jnp
from jax.experimental import pallas as pl
from jax.experimental.pallas import tpu as pltpu


# ----------------------------- math helpers (f32) -----------------------------

# Abramowitz & Stegun 7.1.26 erf approximation, max abs error ~1.5e-7 (~f32 ulp),
# built only from ops guaranteed to lower in Mosaic (exp / div / select).
_ERF_P = 0.3275911
_ERF_A = (0.254829592, -0.284496736, 1.421413741, -1.453152027, 1.061405429)


def _erf_approx(x):
    sgn = jnp.where(x >= 0.0, 1.0, -1.0)
    a = jnp.abs(x)
    t = 1.0 / (1.0 + _ERF_P * a)
    a1, a2, a3, a4, a5 = _ERF_A
    poly = ((((a5 * t + a4) * t + a3) * t + a2) * t + a1) * t
    return sgn * (1.0 - poly * jnp.exp(-a * a))


def _gelu_exact(x):
    # HF "gelu" (erf form), evaluated in f32.
    return 0.5 * x * (1.0 + _erf_approx(x * (1.0 / math.sqrt(2.0))))


def _layernorm_f32(y, gamma, beta, eps):
    mu = jnp.mean(y, axis=-1, keepdims=True)
    yc = y - mu
    var = jnp.mean(yc * yc, axis=-1, keepdims=True)
    return yc * jax.lax.rsqrt(var + eps) * gamma + beta


# ----------------------------- fused encoder-layer kernel -----------------------------

def _encoder_layer_kernel(x_ref, mask_ref,
                          qkv_w_ref, qkv_b_ref,
                          ao_w_ref, ao_b_ref, ln1_g_ref, ln1_b_ref,
                          i_w_ref, i_b_ref,
                          o_w_ref, o_b_ref, ln2_g_ref, ln2_b_ref,
                          o_ref, *, n_heads, head_dim, eps):
    """One batch element: x (S,H) bf16, mask (1,S) f32 -> layer output (S,H) bf16."""
    H = n_heads * head_dim

    x = x_ref[...]                                       # (S, H) bf16
    mask = mask_ref[...].astype(jnp.float32)             # (1, S)
    bias = (1.0 - mask) * -10000.0                       # HF extended attention mask

    # --- fused QKV projection (1/sqrt(Dh) already folded into the Q columns) ---
    qkv = jnp.dot(x, qkv_w_ref[...], preferred_element_type=jnp.float32)
    qkv = (qkv + qkv_b_ref[...]).astype(jnp.bfloat16)    # (S, 3H)

    # --- per-head attention, static unroll (S, Dh small at this config) ---
    ctxs = []
    for h in range(n_heads):
        q = qkv[:, h * head_dim:(h + 1) * head_dim]                     # (S, Dh)
        k = qkv[:, H + h * head_dim:H + (h + 1) * head_dim]             # (S, Dh)
        v = qkv[:, 2 * H + h * head_dim:2 * H + (h + 1) * head_dim]     # (S, Dh)
        s = jax.lax.dot_general(q, k, (((1,), (1,)), ((), ())),
                                preferred_element_type=jnp.float32)     # (S, S)
        s = s + bias
        m = jnp.max(s, axis=-1, keepdims=True)
        p = jnp.exp(s - m)
        denom = jnp.sum(p, axis=-1, keepdims=True)
        p = p * pl.reciprocal(denom, approx=True)
        ctxs.append(jnp.dot(p.astype(jnp.bfloat16), v,
                            preferred_element_type=jnp.float32))
    ctx = jnp.concatenate(ctxs, axis=-1).astype(jnp.bfloat16)           # (S, H)

    # --- attention output projection + residual + LayerNorm (all fused) ---
    y = jnp.dot(ctx, ao_w_ref[...], preferred_element_type=jnp.float32)
    y = y + ao_b_ref[...] + x.astype(jnp.float32)
    x1 = _layernorm_f32(y, ln1_g_ref[...], ln1_b_ref[...], eps)         # (S, H) f32
    x1_bf = x1.astype(jnp.bfloat16)

    # --- FFN1 + exact-erf GELU ---
    h1 = jnp.dot(x1_bf, i_w_ref[...], preferred_element_type=jnp.float32)
    h1 = _gelu_exact(h1 + i_b_ref[...]).astype(jnp.bfloat16)            # (S, I)

    # --- FFN2 + residual + LayerNorm ---
    y2 = jnp.dot(h1, o_w_ref[...], preferred_element_type=jnp.float32)
    y2 = y2 + o_b_ref[...] + x1
    o_ref[...] = _layernorm_f32(y2, ln2_g_ref[...], ln2_b_ref[...],
                                eps).astype(o_ref.dtype)


def encoder_layer(x, mask, lp, n_heads, head_dim, eps=1e-12):
    """x:(B,S,H) bf16, mask:(B,1,S) f32 -> (B,S,H) bf16; one pallas_call, grid=(B,)."""
    B, S, H = x.shape
    I = lp["i_w"].shape[1]
    threeH = 3 * H
    const = lambda b: (0, 0)   # all weights: one VMEM-resident block for the whole grid

    return pl.pallas_call(
        functools.partial(_encoder_layer_kernel, n_heads=n_heads,
                          head_dim=head_dim, eps=eps),
        out_shape=jax.ShapeDtypeStruct((B, S, H), jnp.bfloat16),
        grid=(B,),
        in_specs=[
            pl.BlockSpec((None, S, H), lambda b: (b, 0, 0)),     # x
            pl.BlockSpec((None, 1, S), lambda b: (b, 0, 0)),     # mask
            pl.BlockSpec((H, threeH), const),                    # qkv_w
            pl.BlockSpec((1, threeH), const),                    # qkv_b
            pl.BlockSpec((H, H), const),                         # ao_w
            pl.BlockSpec((1, H), const),                         # ao_b
            pl.BlockSpec((1, H), const),                         # attn_ln_g
            pl.BlockSpec((1, H), const),                         # attn_ln_b
            pl.BlockSpec((H, I), const),                         # i_w
            pl.BlockSpec((1, I), const),                         # i_b
            pl.BlockSpec((I, H), const),                         # o_w
            pl.BlockSpec((1, H), const),                         # o_b
            pl.BlockSpec((1, H), const),                         # out_ln_g
            pl.BlockSpec((1, H), const),                         # out_ln_b
        ],
        out_specs=pl.BlockSpec((None, S, H), lambda b: (b, 0, 0)),
        compiler_params=pltpu.CompilerParams(
            dimension_semantics=("parallel",)),
    )(x, mask,
      lp["qkv_w"], lp["qkv_b"].reshape(1, threeH),
      lp["ao_w"], lp["ao_b"].reshape(1, H),
      lp["attn_ln_g"].reshape(1, H), lp["attn_ln_b"].reshape(1, H),
      lp["i_w"], lp["i_b"].reshape(1, I),
      lp["o_w"], lp["o_b"].reshape(1, H),
      lp["out_ln_g"].reshape(1, H), lp["out_ln_b"].reshape(1, H))


# ----------------------------- model assembly -----------------------------

def init_params(key, cfg):
    H, I, V, P, L = (cfg["hidden"], cfg["intermediate"], cfg["vocab"],
                     cfg["max_pos"], cfg["num_layers"])
    nH = cfg["heads"]
    Dh = H // nH
    std = 0.02  # BERT initializer_range
    keys = iter(jax.random.split(key, 8 + 8 * L))
    bf = jnp.bfloat16

    def nrm(shape):
        return jax.random.normal(next(keys), shape, jnp.float32) * std

    params = {
        "word_emb": nrm((V, H)),
        "pos_emb": nrm((P, H)),
        "tok_emb": nrm((2, H)),
        "emb_ln_g": jnp.ones((H,), jnp.float32),
        "emb_ln_b": jnp.zeros((H,), jnp.float32),
        "pooler_w": nrm((H, H)),
        "pooler_b": jnp.zeros((H,), jnp.float32),
        "tune_w": nrm((H, 2)),        # self.tune = nn.Linear(hidden, 2)
        "tune_b": jnp.zeros((2,), jnp.float32),
        "layers": [],
    }
    q_scale = 1.0 / math.sqrt(Dh)
    for _ in range(L):
        # q|k|v fused along the output dim; fold 1/sqrt(Dh) into the Q part so
        # the attention kernel never multiplies the (S,S) score tiles.
        qkv_w = nrm((H, 3 * H))
        qkv_b = jnp.zeros((3 * H,), jnp.float32)
        qkv_w = qkv_w.at[:, :H].multiply(q_scale)
        qkv_b = qkv_b.at[:H].multiply(q_scale)
        params["layers"].append({
            "qkv_w": qkv_w.astype(bf), "qkv_b": qkv_b,
            "ao_w": nrm((H, H)).astype(bf), "ao_b": jnp.zeros((H,), jnp.float32),
            "attn_ln_g": jnp.ones((H,), jnp.float32),
            "attn_ln_b": jnp.zeros((H,), jnp.float32),
            "i_w": nrm((H, I)).astype(bf), "i_b": jnp.zeros((I,), jnp.float32),
            "o_w": nrm((I, H)).astype(bf), "o_b": jnp.zeros((H,), jnp.float32),
            "out_ln_g": jnp.ones((H,), jnp.float32),
            "out_ln_b": jnp.zeros((H,), jnp.float32),
        })
    return params


def bert_forward(params, input_ids, attention_mask, token_type_ids, cfg):
    B, S = input_ids.shape
    H = cfg["hidden"]
    nH = cfg["heads"]
    Dh = H // nH

    # --- embeddings + LayerNorm in plain JAX (XLA fuses the gather/add/LN;
    #     dropout is an eval-mode no-op) ---
    # TODO(synk): the embedding row gather is a dynamic-index lookup with no
    # clean Pallas path at this scale; done with jnp.take.
    pos = jnp.arange(S, dtype=jnp.int32)[None, :]
    emb = (jnp.take(params["word_emb"], input_ids, axis=0)
           + jnp.take(params["pos_emb"], pos, axis=0)
           + jnp.take(params["tok_emb"], token_type_ids, axis=0))      # (B,S,H) f32
    mu = jnp.mean(emb, axis=-1, keepdims=True)
    ec = emb - mu
    var = jnp.mean(ec * ec, axis=-1, keepdims=True)
    x = (ec * jax.lax.rsqrt(var + 1e-12) * params["emb_ln_g"]
         + params["emb_ln_b"]).astype(jnp.bfloat16)                    # (B,S,H) bf16

    # (B,1,S) mask; the HF (1-mask)*-10000 bias is built inside the kernel.
    mask = attention_mask.astype(jnp.float32).reshape(B, 1, S)

    # --- encoder: ONE fused pallas_call per layer ---
    for lp in params["layers"]:
        x = encoder_layer(x, mask, lp, nH, Dh)                         # (B,S,H) bf16

    # --- pooler + classification head in plain JAX (per perf review: a
    # (B,H)x(H,2) matmul in Pallas is pure launch overhead; XLA fuses it). ---
    cls = x[:, 0, :].astype(jnp.float32)                               # (B,H)
    pooled = jnp.tanh(cls @ params["pooler_w"] + params["pooler_b"])
    logits = pooled @ params["tune_w"] + params["tune_b"]              # (B,2)
    return logits


# ----------------------------------- main -----------------------------------

if __name__ == "__main__":
    # Synthetic small config: hidden=128 stands in for the 2048 of the original
    # module (the `tune` head is Linear(hidden, 2), matching pooler_output width).
    cfg = dict(vocab=100, hidden=128, intermediate=512, heads=4,
               num_layers=2, max_pos=16)
    B, S = 2, 8

    key = jax.random.PRNGKey(0)
    kp, ki, kt = jax.random.split(key, 3)

    params = init_params(kp, cfg)
    input_ids = jax.random.randint(ki, (B, S), 0, cfg["vocab"], dtype=jnp.int32)
    token_type_ids = jax.random.randint(kt, (B, S), 0, 2, dtype=jnp.int32)
    attention_mask = jnp.ones((B, S), jnp.int32).at[1, -2:].set(0)  # pad last 2 of batch 1

    logits = bert_forward(params, input_ids, attention_mask, token_type_ids, cfg)
    logits = jax.block_until_ready(logits)

    assert logits.shape == (B, 2), logits.shape
    assert bool(jnp.all(jnp.isfinite(logits)))
    print("KERNEL_OK")
</pallas_src>

<mosaic_0001>
module attributes {stable_mosaic.version = 11 : i64} {
  func.func @_encoder_layer_kernel(%arg0: i32, %arg1: memref<1x8x128xbf16, #tpu.memory_space<vmem>>, %arg2: memref<1x1x8xf32, #tpu.memory_space<vmem>>, %arg3: memref<128x384xbf16, #tpu.memory_space<vmem>>, %arg4: memref<1x384xf32, #tpu.memory_space<vmem>>, %arg5: memref<128x128xbf16, #tpu.memory_space<vmem>>, %arg6: memref<1x128xf32, #tpu.memory_space<vmem>>, %arg7: memref<1x128xf32, #tpu.memory_space<vmem>>, %arg8: memref<1x128xf32, #tpu.memory_space<vmem>>, %arg9: memref<128x512xbf16, #tpu.memory_space<vmem>>, %arg10: memref<1x512xf32, #tpu.memory_space<vmem>>, %arg11: memref<512x128xbf16, #tpu.memory_space<vmem>>, %arg12: memref<1x128xf32, #tpu.memory_space<vmem>>, %arg13: memref<1x128xf32, #tpu.memory_space<vmem>>, %arg14: memref<1x128xf32, #tpu.memory_space<vmem>>, %arg15: memref<1x8x128xbf16, #tpu.memory_space<vmem>>) attributes {dimension_semantics = [#tpu.dimension_semantics<parallel>], iteration_bounds = array<i64: 2>, scalar_prefetch = 0 : i64, scratch_operands = 0 : i64, tpu.core_type = #tpu.core_type<tc>, window_params = [{transform_indices = @transform_0, window_bounds = array<i64: 1, 8, 128>}, {transform_indices = @transform_1, window_bounds = array<i64: 1, 1, 8>}, {pipeline_mode = #tpu.pipeline_mode<synchronous>, transform_indices = @transform_2, window_bounds = array<i64: 128, 384>}, {pipeline_mode = #tpu.pipeline_mode<synchronous>, transform_indices = @transform_3, window_bounds = array<i64: 1, 384>}, {pipeline_mode = #tpu.pipeline_mode<synchronous>, transform_indices = @transform_4, window_bounds = array<i64: 128, 128>}, {pipeline_mode = #tpu.pipeline_mode<synchronous>, transform_indices = @transform_5, window_bounds = array<i64: 1, 128>}, {pipeline_mode = #tpu.pipeline_mode<synchronous>, transform_indices = @transform_6, window_bounds = array<i64: 1, 128>}, {pipeline_mode = #tpu.pipeline_mode<synchronous>, transform_indices = @transform_7, window_bounds = array<i64: 1, 128>}, {pipeline_mode = #tpu.pipeline_mode<synchronous>, transform_indices = @transform_8, window_bounds = array<i64: 128, 512>}, {pipeline_mode = #tpu.pipeline_mode<synchronous>, transform_indices = @transform_9, window_bounds = array<i64: 1, 512>}, {pipeline_mode = #tpu.pipeline_mode<synchronous>, transform_indices = @transform_10, window_bounds = array<i64: 512, 128>}, {pipeline_mode = #tpu.pipeline_mode<synchronous>, transform_indices = @transform_11, window_bounds = array<i64: 1, 128>}, {pipeline_mode = #tpu.pipeline_mode<synchronous>, transform_indices = @transform_12, window_bounds = array<i64: 1, 128>}, {pipeline_mode = #tpu.pipeline_mode<synchronous>, transform_indices = @transform_13, window_bounds = array<i64: 1, 128>}, {transform_indices = @transform_14, window_bounds = array<i64: 1, 8, 128>}]} {
    %c0 = arith.constant 0 : index
    %c0_0 = arith.constant 0 : index
    %c0_1 = arith.constant 0 : index
    %0 = vector.load %arg1[%c0, %c0_0, %c0_1] : memref<1x8x128xbf16, #tpu.memory_space<vmem>>, vector<1x8x128xbf16>
    %1 = vector.shape_cast %0 : vector<1x8x128xbf16> to vector<8x128xbf16>
    %c0_2 = arith.constant 0 : index
    %c0_3 = arith.constant 0 : index
    %c0_4 = arith.constant 0 : index
    %2 = vector.load %arg2[%c0_2, %c0_3, %c0_4] : memref<1x1x8xf32, #tpu.memory_space<vmem>>, vector<1x1x8xf32>
    %3 = vector.shape_cast %2 : vector<1x1x8xf32> to vector<1x8xf32>
    %cst = arith.constant 1.000000e+00 : f32
    %4 = vector.broadcast %cst : f32 to vector<1x8xf32>
    %5 = arith.subf %4, %3 : vector<1x8xf32>
    %cst_5 = arith.constant -1.000000e+04 : f32
    %6 = vector.broadcast %cst_5 : f32 to vector<1x8xf32>
    %7 = arith.mulf %5, %6 : vector<1x8xf32>
    %c0_6 = arith.constant 0 : index
    %c0_7 = arith.constant 0 : index
    %8 = vector.load %arg3[%c0_6, %c0_7] : memref<128x384xbf16, #tpu.memory_space<vmem>>, vector<128x384xbf16>
    %cst_8 = arith.constant dense<0.000000e+00> : vector<8x384xf32>
    %9 = tpu.matmul %1, %8, %cst_8 {dimension_numbers = #tpu.dot_dimension_numbers<[1], [0], [0], [1], [0, 0, 1, 1], [], []>} : vector<8x128xbf16>, vector<128x384xbf16>, vector<8x384xf32> -> vector<8x384xf32>
    %c0_9 = arith.constant 0 : index
    %c0_10 = arith.constant 0 : index
    %10 = vector.load %arg4[%c0_9, %c0_10] : memref<1x384xf32, #tpu.memory_space<vmem>>, vector<1x384xf32>
    %11 = vector.broadcast %10 : vector<1x384xf32> to vector<8x384xf32>
    %12 = arith.addf %9, %11 : vector<8x384xf32>
    %13 = arith.truncf %12 : vector<8x384xf32> to vector<8x384xbf16>
    %14 = vector.extract_strided_slice %13 {offsets = [0, 0], sizes = [8, 32], strides = [1, 1]} : vector<8x384xbf16> to vector<8x32xbf16>
    %15 = vector.extract_strided_slice %13 {offsets = [0, 128], sizes = [8, 32], strides = [1, 1]} : vector<8x384xbf16> to vector<8x32xbf16>
    %16 = vector.extract_strided_slice %13 {offsets = [0, 256], sizes = [8, 32], strides = [1, 1]} : vector<8x384xbf16> to vector<8x32xbf16>
    %cst_11 = arith.constant dense<0.000000e+00> : vector<8x8xf32>
    %17 = tpu.matmul %14, %15, %cst_11 {dimension_numbers = #tpu.dot_dimension_numbers<[1], [1], [0], [0], [0, 0, 1, 0], [], []>} : vector<8x32xbf16>, vector<8x32xbf16>, vector<8x8xf32> -> vector<8x8xf32>
    %18 = vector.broadcast %7 : vector<1x8xf32> to vector<8x8xf32>
    %19 = arith.addf %17, %18 : vector<8x8xf32>
    %cst_12 = arith.constant dense<0xFF800000> : vector<8xf32>
    %20 = vector.multi_reduction <maximumf>, %19, %cst_12 [1] : vector<8x8xf32> to vector<8xf32>
    %21 = vector.shape_cast %20 : vector<8xf32> to vector<8x1xf32>
    %22 = vector.broadcast %21 : vector<8x1xf32> to vector<8x8xf32>
    %23 = arith.subf %19, %22 : vector<8x8xf32>
    %24 = math.exp %23 : vector<8x8xf32>
    %cst_13 = arith.constant dense<0.000000e+00> : vector<8xf32>
    %25 = vector.multi_reduction <add>, %24, %cst_13 [1] : vector<8x8xf32> to vector<8xf32>
    %26 = vector.shape_cast %25 : vector<8xf32> to vector<8x1xf32>
    %27 = tpu.reciprocal %26 {approx = true} : vector<8x1xf32> -> vector<8x1xf32>
    %28 = vector.broadcast %27 : vector<8x1xf32> to vector<8x8xf32>
    %29 = arith.mulf %24, %28 : vector<8x8xf32>
    %30 = arith.truncf %29 : vector<8x8xf32> to vector<8x8xbf16>
    %cst_14 = arith.constant dense<0.000000e+00> : vector<8x32xf32>
    %31 = tpu.matmul %30, %16, %cst_14 {dimension_numbers = #tpu.dot_dimension_numbers<[1], [0], [0], [1], [0, 0, 1, 1], [], []>} : vector<8x8xbf16>, vector<8x32xbf16>, vector<8x32xf32> -> vector<8x32xf32>
    %32 = vector.extract_strided_slice %13 {offsets = [0, 32], sizes = [8, 32], strides = [1, 1]} : vector<8x384xbf16> to vector<8x32xbf16>
    %33 = vector.extract_strided_slice %13 {offsets = [0, 160], sizes = [8, 32], strides = [1, 1]} : vector<8x384xbf16> to vector<8x32xbf16>
    %34 = vector.extract_strided_slice %13 {offsets = [0, 288], sizes = [8, 32], strides = [1, 1]} : vector<8x384xbf16> to vector<8x32xbf16>
    %cst_15 = arith.constant dense<0.000000e+00> : vector<8x8xf32>
    %35 = tpu.matmul %32, %33, %cst_15 {dimension_numbers = #tpu.dot_dimension_numbers<[1], [1], [0], [0], [0, 0, 1, 0], [], []>} : vector<8x32xbf16>, vector<8x32xbf16>, vector<8x8xf32> -> vector<8x8xf32>
    %36 = vector.broadcast %7 : vector<1x8xf32> to vector<8x8xf32>
    %37 = arith.addf %35, %36 : vector<8x8xf32>
    %cst_16 = arith.constant dense<0xFF800000> : vector<8xf32>
    %38 = vector.multi_reduction <maximumf>, %37, %cst_16 [1] : vector<8x8xf32> to vector<8xf32>
    %39 = vector.shape_cast %38 : vector<8xf32> to vector<8x1xf32>
    %40 = vector.broadcast %39 : vector<8x1xf32> to vector<8x8xf32>
    %41 = arith.subf %37, %40 : vector<8x8xf32>
    %42 = math.exp %41 : vector<8x8xf32>
    %cst_17 = arith.constant dense<0.000000e+00> : vector<8xf32>
    %43 = vector.multi_reduction <add>, %42, %cst_17 [1] : vector<8x8xf32> to vector<8xf32>
    %44 = vector.shape_cast %43 : vector<8xf32> to vector<8x1xf32>
    %45 = tpu.reciprocal %44 {approx = true} : vector<8x1xf32> -> vector<8x1xf32>
    %46 = vector.broadcast %45 : vector<8x1xf32> to vector<8x8xf32>
    %47 = arith.mulf %42, %46 : vector<8x8xf32>
    %48 = arith.truncf %47 : vector<8x8xf32> to vector<8x8xbf16>
    %cst_18 = arith.constant dense<0.000000e+00> : vector<8x32xf32>
    %49 = tpu.matmul %48, %34, %cst_18 {dimension_numbers = #tpu.dot_dimension_numbers<[1], [0], [0], [1], [0, 0, 1, 1], [], []>} : vector<8x8xbf16>, vector<8x32xbf16>, vector<8x32xf32> -> vector<8x32xf32>
    %50 = vector.extract_strided_slice %13 {offsets = [0, 64], sizes = [8, 32], strides = [1, 1]} : vector<8x384xbf16> to vector<8x32xbf16>
    %51 = vector.extract_strided_slice %13 {offsets = [0, 192], sizes = [8, 32], strides = [1, 1]} : vector<8x384xbf16> to vector<8x32xbf16>
    %52 = vector.extract_strided_slice %13 {offsets = [0, 320], sizes = [8, 32], strides = [1, 1]} : vector<8x384xbf16> to vector<8x32xbf16>
    %cst_19 = arith.constant dense<0.000000e+00> : vector<8x8xf32>
    %53 = tpu.matmul %50, %51, %cst_19 {dimension_numbers = #tpu.dot_dimension_numbers<[1], [1], [0], [0], [0, 0, 1, 0], [], []>} : vector<8x32xbf16>, vector<8x32xbf16>, vector<8x8xf32> -> vector<8x8xf32>
    %54 = vector.broadcast %7 : vector<1x8xf32> to vector<8x8xf32>
    %55 = arith.addf %53, %54 : vector<8x8xf32>
    %cst_20 = arith.constant dense<0xFF800000> : vector<8xf32>
    %56 = vector.multi_reduction <maximumf>, %55, %cst_20 [1] : vector<8x8xf32> to vector<8xf32>
    %57 = vector.shape_cast %56 : vector<8xf32> to vector<8x1xf32>
    %58 = vector.broadcast %57 : vector<8x1xf32> to vector<8x8xf32>
    %59 = arith.subf %55, %58 : vector<8x8xf32>
    %60 = math.exp %59 : vector<8x8xf32>
    %cst_21 = arith.constant dense<0.000000e+00> : vector<8xf32>
    %61 = vector.multi_reduction <add>, %60, %cst_21 [1] : vector<8x8xf32> to vector<8xf32>
    %62 = vector.shape_cast %61 : vector<8xf32> to vector<8x1xf32>
    %63 = tpu.reciprocal %62 {approx = true} : vector<8x1xf32> -> vector<8x1xf32>
    %64 = vector.broadcast %63 : vector<8x1xf32> to vector<8x8xf32>
    %65 = arith.mulf %60, %64 : vector<8x8xf32>
    %66 = arith.truncf %65 : vector<8x8xf32> to vector<8x8xbf16>
    %cst_22 = arith.constant dense<0.000000e+00> : vector<8x32xf32>
    %67 = tpu.matmul %66, %52, %cst_22 {dimension_numbers = #tpu.dot_dimension_numbers<[1], [0], [0], [1], [0, 0, 1, 1], [], []>} : vector<8x8xbf16>, vector<8x32xbf16>, vector<8x32xf32> -> vector<8x32xf32>
    %68 = vector.extract_strided_slice %13 {offsets = [0, 96], sizes = [8, 32], strides = [1, 1]} : vector<8x384xbf16> to vector<8x32xbf16>
    %69 = vector.extract_strided_slice %13 {offsets = [0, 224], sizes = [8, 32], strides = [1, 1]} : vector<8x384xbf16> to vector<8x32xbf16>
    %70 = vector.extract_strided_slice %13 {offsets = [0, 352], sizes = [8, 32], strides = [1, 1]} : vector<8x384xbf16> to vector<8x32xbf16>
    %cst_23 = arith.constant dense<0.000000e+00> : vector<8x8xf32>
    %71 = tpu.matmul %68, %69, %cst_23 {dimension_numbers = #tpu.dot_dimension_numbers<[1], [1], [0], [0], [0, 0, 1, 0], [], []>} : vector<8x32xbf16>, vector<8x32xbf16>, vector<8x8xf32> -> vector<8x8xf32>
    %72 = vector.broadcast %7 : vector<1x8xf32> to vector<8x8xf32>
    %73 = arith.addf %71, %72 : vector<8x8xf32>
    %cst_24 = arith.constant dense<0xFF800000> : vector<8xf32>
    %74 = vector.multi_reduction <maximumf>, %73, %cst_24 [1] : vector<8x8xf32> to vector<8xf32>
    %75 = vector.shape_cast %74 : vector<8xf32> to vector<8x1xf32>
    %76 = vector.broadcast %75 : vector<8x1xf32> to vector<8x8xf32>
    %77 = arith.subf %73, %76 : vector<8x8xf32>
    %78 = math.exp %77 : vector<8x8xf32>
    %cst_25 = arith.constant dense<0.000000e+00> : vector<8xf32>
    %79 = vector.multi_reduction <add>, %78, %cst_25 [1] : vector<8x8xf32> to vector<8xf32>
    %80 = vector.shape_cast %79 : vector<8xf32> to vector<8x1xf32>
    %81 = tpu.reciprocal %80 {approx = true} : vector<8x1xf32> -> vector<8x1xf32>
    %82 = vector.broadcast %81 : vector<8x1xf32> to vector<8x8xf32>
    %83 = arith.mulf %78, %82 : vector<8x8xf32>
    %84 = arith.truncf %83 : vector<8x8xf32> to vector<8x8xbf16>
    %cst_26 = arith.constant dense<0.000000e+00> : vector<8x32xf32>
    %85 = tpu.matmul %84, %70, %cst_26 {dimension_numbers = #tpu.dot_dimension_numbers<[1], [0], [0], [1], [0, 0, 1, 1], [], []>} : vector<8x8xbf16>, vector<8x32xbf16>, vector<8x32xf32> -> vector<8x32xf32>
    %86 = tpu.concatenate %31, %49, %67, %85 in 1 : vector<8x32xf32>, vector<8x32xf32>, vector<8x32xf32>, vector<8x32xf32> -> vector<8x128xf32>
    %87 = arith.truncf %86 : vector<8x128xf32> to vector<8x128xbf16>
    %c0_27 = arith.constant 0 : index
    %c0_28 = arith.constant 0 : index
    %88 = vector.load %arg5[%c0_27, %c0_28] : memref<128x128xbf16, #tpu.memory_space<vmem>>, vector<128x128xbf16>
    %cst_29 = arith.constant dense<0.000000e+00> : vector<8x128xf32>
    %89 = tpu.matmul %87, %88, %cst_29 {dimension_numbers = #tpu.dot_dimension_numbers<[1], [0], [0], [1], [0, 0, 1, 1], [], []>} : vector<8x128xbf16>, vector<128x128xbf16>, vector<8x128xf32> -> vector<8x128xf32>
    %c0_30 = arith.constant 0 : index
    %c0_31 = arith.constant 0 : index
    %90 = vector.load %arg6[%c0_30, %c0_31] : memref<1x128xf32, #tpu.memory_space<vmem>>, vector<1x128xf32>
    %91 = vector.broadcast %90 : vector<1x128xf32> to vector<8x128xf32>
    %92 = arith.addf %89, %91 : vector<8x128xf32>
    %93 = arith.extf %1 : vector<8x128xbf16> to vector<8x128xf32>
    %94 = arith.addf %92, %93 : vector<8x128xf32>
    %c0_32 = arith.constant 0 : index
    %c0_33 = arith.constant 0 : index
    %95 = vector.load %arg7[%c0_32, %c0_33] : memref<1x128xf32, #tpu.memory_space<vmem>>, vector<1x128xf32>
    %c0_34 = arith.constant 0 : index
    %c0_35 = arith.constant 0 : index
    %96 = vector.load %arg8[%c0_34, %c0_35] : memref<1x128xf32, #tpu.memory_space<vmem>>, vector<1x128xf32>
    %cst_36 = arith.constant dense<0.000000e+00> : vector<8xf32>
    %97 = vector.multi_reduction <add>, %94, %cst_36 [1] : vector<8x128xf32> to vector<8xf32>
    %98 = vector.shape_cast %97 : vector<8xf32> to vector<8x1xf32>
    %cst_37 = arith.constant 1.280000e+02 : f32
    %99 = vector.broadcast %cst_37 : f32 to vector<8x1xf32>
    %100 = arith.divf %98, %99 : vector<8x1xf32>
    %101 = vector.broadcast %100 : vector<8x1xf32> to vector<8x128xf32>
    %102 = arith.subf %94, %101 : vector<8x128xf32>
    %103 = arith.mulf %102, %102 : vector<8x128xf32>
    %cst_38 = arith.constant dense<0.000000e+00> : vector<8xf32>
    %104 = vector.multi_reduction <add>, %103, %cst_38 [1] : vector<8x128xf32> to vector<8xf32>
    %105 = vector.shape_cast %104 : vector<8xf32> to vector<8x1xf32>
    %cst_39 = arith.constant 1.280000e+02 : f32
    %106 = vector.broadcast %cst_39 : f32 to vector<8x1xf32>
    %107 = arith.divf %105, %106 : vector<8x1xf32>
    %cst_40 = arith.constant 9.99999996E-13 : f32
    %108 = vector.broadcast %cst_40 : f32 to vector<8x1xf32>
    %109 = arith.addf %107, %108 : vector<8x1xf32>
    %110 = math.rsqrt %109 : vector<8x1xf32>
    %111 = vector.broadcast %110 : vector<8x1xf32> to vector<8x128xf32>
    %112 = arith.mulf %102, %111 : vector<8x128xf32>
    %113 = vector.broadcast %95 : vector<1x128xf32> to vector<8x128xf32>
    %114 = arith.mulf %112, %113 : vector<8x128xf32>
    %115 = vector.broadcast %96 : vector<1x128xf32> to vector<8x128xf32>
    %116 = arith.addf %114, %115 : vector<8x128xf32>
    %117 = arith.truncf %116 : vector<8x128xf32> to vector<8x128xbf16>
    %c0_41 = arith.constant 0 : index
    %c0_42 = arith.constant 0 : index
    %118 = vector.load %arg9[%c0_41, %c0_42] : memref<128x512xbf16, #tpu.memory_space<vmem>>, vector<128x512xbf16>
    %cst_43 = arith.constant dense<0.000000e+00> : vector<8x512xf32>
    %119 = tpu.matmul %117, %118, %cst_43 {dimension_numbers = #tpu.dot_dimension_numbers<[1], [0], [0], [1], [0, 0, 1, 1], [], []>} : vector<8x128xbf16>, vector<128x512xbf16>, vector<8x512xf32> -> vector<8x512xf32>
    %c0_44 = arith.constant 0 : index
    %c0_45 = arith.constant 0 : index
    %120 = vector.load %arg10[%c0_44, %c0_45] : memref<1x512xf32, #tpu.memory_space<vmem>>, vector<1x512xf32>
    %121 = vector.broadcast %120 : vector<1x512xf32> to vector<8x512xf32>
    %122 = arith.addf %119, %121 : vector<8x512xf32>
    %cst_46 = arith.constant 5.000000e-01 : f32
    %123 = vector.broadcast %cst_46 : f32 to vector<8x512xf32>
    %124 = arith.mulf %123, %122 : vector<8x512xf32>
    %cst_47 = arith.constant 0.707106769 : f32
    %125 = vector.broadcast %cst_47 : f32 to vector<8x512xf32>
    %126 = arith.mulf %122, %125 : vector<8x512xf32>
    %cst_48 = arith.constant 0.000000e+00 : f32
    %127 = vector.broadcast %cst_48 : f32 to vector<8x512xf32>
    %128 = arith.cmpf oge, %126, %127 : vector<8x512xf32>
    %cst_49 = arith.constant 1.000000e+00 : f32
    %cst_50 = arith.constant -1.000000e+00 : f32
    %129 = vector.broadcast %cst_49 : f32 to vector<8x512xf32>
    %130 = vector.broadcast %cst_50 : f32 to vector<8x512xf32>
    %131 = arith.select %128, %129, %130 : vector<8x512xi1>, vector<8x512xf32>
    %132 = math.absf %126 : vector<8x512xf32>
    %cst_51 = arith.constant 0.327591091 : f32
    %133 = vector.broadcast %cst_51 : f32 to vector<8x512xf32>
    %134 = arith.mulf %133, %132 : vector<8x512xf32>
    %cst_52 = arith.constant 1.000000e+00 : f32
    %135 = vector.broadcast %cst_52 : f32 to vector<8x512xf32>
    %136 = arith.addf %135, %134 : vector<8x512xf32>
    %cst_53 = arith.constant 1.000000e+00 : f32
    %137 = vector.broadcast %cst_53 : f32 to vector<8x512xf32>
    %138 = arith.divf %137, %136 : vector<8x512xf32>
    %cst_54 = arith.constant 1.06140542 : f32
    %139 = vector.broadcast %cst_54 : f32 to vector<8x512xf32>
    %140 = arith.mulf %139, %138 : vector<8x512xf32>
    %cst_55 = arith.constant -1.45315206 : f32
    %141 = vector.broadcast %cst_55 : f32 to vector<8x512xf32>
    %142 = arith.addf %140, %141 : vector<8x512xf32>
    %143 = arith.mulf %142, %138 : vector<8x512xf32>
    %cst_56 = arith.constant 1.42141378 : f32
    %144 = vector.broadcast %cst_56 : f32 to vector<8x512xf32>
    %145 = arith.addf %143, %144 : vector<8x512xf32>
    %146 = arith.mulf %145, %138 : vector<8x512xf32>
    %cst_57 = arith.constant -0.284496725 : f32
    %147 = vector.broadcast %cst_57 : f32 to vector<8x512xf32>
    %148 = arith.addf %146, %147 : vector<8x512xf32>
    %149 = arith.mulf %148, %138 : vector<8x512xf32>
    %cst_58 = arith.constant 0.254829586 : f32
    %150 = vector.broadcast %cst_58 : f32 to vector<8x512xf32>
    %151 = arith.addf %149, %150 : vector<8x512xf32>
    %152 = arith.mulf %151, %138 : vector<8x512xf32>
    %cst_59 = arith.constant 0.000000e+00 : f32
    %153 = vector.broadcast %cst_59 : f32 to vector<8x512xf32>
    %154 = arith.subf %153, %132 : vector<8x512xf32>
    %155 = arith.mulf %154, %132 : vector<8x512xf32>
    %156 = math.exp %155 : vector<8x512xf32>
    %157 = arith.mulf %152, %156 : vector<8x512xf32>
    %cst_60 = arith.constant 1.000000e+00 : f32
    %158 = vector.broadcast %cst_60 : f32 to vector<8x512xf32>
    %159 = arith.subf %158, %157 : vector<8x512xf32>
    %160 = arith.mulf %131, %159 : vector<8x512xf32>
    %cst_61 = arith.constant 1.000000e+00 : f32
    %161 = vector.broadcast %cst_61 : f32 to vector<8x512xf32>
    %162 = arith.addf %161, %160 : vector<8x512xf32>
    %163 = arith.mulf %124, %162 : vector<8x512xf32>
    %164 = arith.truncf %163 : vector<8x512xf32> to vector<8x512xbf16>
    %c0_62 = arith.constant 0 : index
    %c0_63 = arith.constant 0 : index
    %165 = vector.load %arg11[%c0_62, %c0_63] : memref<512x128xbf16, #tpu.memory_space<vmem>>, vector<512x128xbf16>
    %cst_64 = arith.constant dense<0.000000e+00> : vector<8x128xf32>
    %166 = tpu.matmul %164, %165, %cst_64 {dimension_numbers = #tpu.dot_dimension_numbers<[1], [0], [0], [1], [0, 0, 1, 1], [], []>} : vector<8x512xbf16>, vector<512x128xbf16>, vector<8x128xf32> -> vector<8x128xf32>
    %c0_65 = arith.constant 0 : index
    %c0_66 = arith.constant 0 : index
    %167 = vector.load %arg12[%c0_65, %c0_66] : memref<1x128xf32, #tpu.memory_space<vmem>>, vector<1x128xf32>
    %168 = vector.broadcast %167 : vector<1x128xf32> to vector<8x128xf32>
    %169 = arith.addf %166, %168 : vector<8x128xf32>
    %170 = arith.addf %169, %116 : vector<8x128xf32>
    %c0_67 = arith.constant 0 : index
    %c0_68 = arith.constant 0 : index
    %171 = vector.load %arg13[%c0_67, %c0_68] : memref<1x128xf32, #tpu.memory_space<vmem>>, vector<1x128xf32>
    %c0_69 = arith.constant 0 : index
    %c0_70 = arith.constant 0 : index
    %172 = vector.load %arg14[%c0_69, %c0_70] : memref<1x128xf32, #tpu.memory_space<vmem>>, vector<1x128xf32>
    %cst_71 = arith.constant dense<0.000000e+00> : vector<8xf32>
    %173 = vector.multi_reduction <add>, %170, %cst_71 [1] : vector<8x128xf32> to vector<8xf32>
    %174 = vector.shape_cast %173 : vector<8xf32> to vector<8x1xf32>
    %cst_72 = arith.constant 1.280000e+02 : f32
    %175 = vector.broadcast %cst_72 : f32 to vector<8x1xf32>
    %176 = arith.divf %174, %175 : vector<8x1xf32>
    %177 = vector.broadcast %176 : vector<8x1xf32> to vector<8x128xf32>
    %178 = arith.subf %170, %177 : vector<8x128xf32>
    %179 = arith.mulf %178, %178 : vector<8x128xf32>
    %cst_73 = arith.constant dense<0.000000e+00> : vector<8xf32>
    %180 = vector.multi_reduction <add>, %179, %cst_73 [1] : vector<8x128xf32> to vector<8xf32>
    %181 = vector.shape_cast %180 : vector<8xf32> to vector<8x1xf32>
    %cst_74 = arith.constant 1.280000e+02 : f32
    %182 = vector.broadcast %cst_74 : f32 to vector<8x1xf32>
    %183 = arith.divf %181, %182 : vector<8x1xf32>
    %cst_75 = arith.constant 9.99999996E-13 : f32
    %184 = vector.broadcast %cst_75 : f32 to vector<8x1xf32>
    %185 = arith.addf %183, %184 : vector<8x1xf32>
    %186 = math.rsqrt %185 : vector<8x1xf32>
    %187 = vector.broadcast %186 : vector<8x1xf32> to vector<8x128xf32>
    %188 = arith.mulf %178, %187 : vector<8x128xf32>
    %189 = vector.broadcast %171 : vector<1x128xf32> to vector<8x128xf32>
    %190 = arith.mulf %188, %189 : vector<8x128xf32>
    %191 = vector.broadcast %172 : vector<1x128xf32> to vector<8x128xf32>
    %192 = arith.addf %190, %191 : vector<8x128xf32>
    %193 = arith.truncf %192 : vector<8x128xf32> to vector<8x128xbf16>
    %c0_76 = arith.constant 0 : index
    %c0_77 = arith.constant 0 : index
    %c0_78 = arith.constant 0 : index
    %194 = vector.load %arg15[%c0_76, %c0_77, %c0_78] : memref<1x8x128xbf16, #tpu.memory_space<vmem>>, vector<1x8x128xbf16>
    %195 = vector.shape_cast %194 : vector<1x8x128xbf16> to vector<8x128xbf16>
    %196 = vector.shape_cast %193 : vector<8x128xbf16> to vector<1x8x128xbf16>
    tpu.vector_store %arg15[%c0_76, %c0_77, %c0_78], %196 {strides = array<i32>} : memref<1x8x128xbf16, #tpu.memory_space<vmem>>, vector<1x8x128xbf16>,
    return
  }
  func.func @transform_0(%arg0: i32) -> (i32, i32, i32) {
    %c0_i32 = arith.constant 0 : i32
    %c0_i32_0 = arith.constant 0 : i32
    %c0_i32_1 = arith.constant 0 : i32
    return %arg0, %c0_i32, %c0_i32_0 : i32, i32, i32
  }
  func.func @transform_1(%arg0: i32) -> (i32, i32, i32) {
    %c0_i32 = arith.constant 0 : i32
    %c0_i32_0 = arith.constant 0 : i32
    %c0_i32_1 = arith.constant 0 : i32
    return %arg0, %c0_i32, %c0_i32_0 : i32, i32, i32
  }
  func.func @transform_2(%arg0: i32) -> (i32, i32) {
    %c0_i32 = arith.constant 0 : i32
    %c0_i32_0 = arith.constant 0 : i32
    %c0_i32_1 = arith.constant 0 : i32
    return %c0_i32, %c0_i32_0 : i32, i32
  }
  func.func @transform_3(%arg0: i32) -> (i32, i32) {
    %c0_i32 = arith.constant 0 : i32
    %c0_i32_0 = arith.constant 0 : i32
    %c0_i32_1 = arith.constant 0 : i32
    return %c0_i32, %c0_i32_0 : i32, i32
  }
  func.func @transform_4(%arg0: i32) -> (i32, i32) {
    %c0_i32 = arith.constant 0 : i32
    %c0_i32_0 = arith.constant 0 : i32
    %c0_i32_1 = arith.constant 0 : i32
    return %c0_i32, %c0_i32_0 : i32, i32
  }
  func.func @transform_5(%arg0: i32) -> (i32, i32) {
    %c0_i32 = arith.constant 0 : i32
    %c0_i32_0 = arith.constant 0 : i32
    %c0_i32_1 = arith.constant 0 : i32
    return %c0_i32, %c0_i32_0 : i32, i32
  }
  func.func @transform_6(%arg0: i32) -> (i32, i32) {
    %c0_i32 = arith.constant 0 : i32
    %c0_i32_0 = arith.constant 0 : i32
    %c0_i32_1 = arith.constant 0 : i32
    return %c0_i32, %c0_i32_0 : i32, i32
  }
  func.func @transform_7(%arg0: i32) -> (i32, i32) {
    %c0_i32 = arith.constant 0 : i32
    %c0_i32_0 = arith.constant 0 : i32
    %c0_i32_1 = arith.constant 0 : i32
    return %c0_i32, %c0_i32_0 : i32, i32
  }
  func.func @transform_8(%arg0: i32) -> (i32, i32) {
    %c0_i32 = arith.constant 0 : i32
    %c0_i32_0 = arith.constant 0 : i32
    %c0_i32_1 = arith.constant 0 : i32
    return %c0_i32, %c0_i32_0 : i32, i32
  }
  func.func @transform_9(%arg0: i32) -> (i32, i32) {
    %c0_i32 = arith.constant 0 : i32
    %c0_i32_0 = arith.constant 0 : i32
    %c0_i32_1 = arith.constant 0 : i32
    return %c0_i32, %c0_i32_0 : i32, i32
  }
  func.func @transform_10(%arg0: i32) -> (i32, i32) {
    %c0_i32 = arith.constant 0 : i32
    %c0_i32_0 = arith.constant 0 : i32
    %c0_i32_1 = arith.constant 0 : i32
    return %c0_i32, %c0_i32_0 : i32, i32
  }
  func.func @transform_11(%arg0: i32) -> (i32, i32) {
    %c0_i32 = arith.constant 0 : i32
    %c0_i32_0 = arith.constant 0 : i32
    %c0_i32_1 = arith.constant 0 : i32
    return %c0_i32, %c0_i32_0 : i32, i32
  }
  func.func @transform_12(%arg0: i32) -> (i32, i32) {
    %c0_i32 = arith.constant 0 : i32
    %c0_i32_0 = arith.constant 0 : i32
    %c0_i32_1 = arith.constant 0 : i32
    return %c0_i32, %c0_i32_0 : i32, i32
  }
  func.func @transform_13(%arg0: i32) -> (i32, i32) {
    %c0_i32 = arith.constant 0 : i32
    %c0_i32_0 = arith.constant 0 : i32
    %c0_i32_1 = arith.constant 0 : i32
    return %c0_i32, %c0_i32_0 : i32, i32
  }
  func.func @transform_14(%arg0: i32) -> (i32, i32, i32) {
    %c0_i32 = arith.constant 0 : i32
    %c0_i32_0 = arith.constant 0 : i32
    %c0_i32_1 = arith.constant 0 : i32
    return %arg0, %c0_i32, %c0_i32_0 : i32, i32, i32
  }
}

</mosaic_0001>

<bundles_post_ra>
// kernel: tpu_custom_call.1
= control target key start
LH: loop header
LB: loop body
LE: loop exit
PB: predicated region body
PF: predicated region fallthrough
CT: control target
= control target key end

     0   :  { %s3555_s0 = inlined_call_operand.hbm [shape: bf16[2,8,128], index: 0, kind: input, shape index: {}]   ;;  %s3556_s1 = inlined_call_operand.hbm [shape: f32[2,1,8], index: 1, kind: input, shape index: {}]   ;;  %s3557_s2 = inlined_call_operand.hbm [shape: bf16[128,384], index: 2, kind: input, shape index: {}]   ;;  %s3558_s3 = inlined_call_operand.hbm [shape: f32[1,384], index: 3, kind: input, shape index: {}]   ;;  %s3559_s4 = inlined_call_operand.hbm [shape: bf16[128,128], index: 4, kind: input, shape index: {}]   ;;  %s3560_s5 = inlined_call_operand.vmem [shape: f32[1,128], index: 5, kind: input, shape index: {}]   ;;  %s3561_s6 = inlined_call_operand.vmem [shape: f32[1,128], index: 6, kind: input, shape index: {}]   ;;  %s3562_s7 = inlined_call_operand.vmem [shape: f32[1,128], index: 7, kind: input, shape index: {}]   ;;  %s3563_s8 = inlined_call_operand.hbm [shape: bf16[128,512], index: 8, kind: input, shape index: {}]   ;;  %s3564_s9 = inlined_call_operand.vmem [shape: f32[1,512], index: 9, kind: input, shape index: {}]   ;;  %s3565_s10 = inlined_call_operand.hbm [shape: bf16[512,128], index: 10, kind: input, shape index: {}]   ;;  %s3566_s11 = inlined_call_operand.vmem [shape: f32[1,128], index: 11, kind: input, shape index: {}]   ;;  %s3567_s12 = inlined_call_operand.vmem [shape: f32[1,128], index: 12, kind: input, shape index: {}]   ;;  %s3568_s13 = inlined_call_operand.vmem [shape: f32[1,128], index: 13, kind: input, shape index: {}]   ;;  %s3569_s14 = inlined_call_operand.hbm [shape: bf16[2,8,128], index: 14, kind: output, shape index: {}]  }
   0x1   :  { %3576 = sst [smem:[#allocation26_spill]] %s3557_s2 }
   0x2   :  { %3577 = sst [smem:[#allocation27_spill]] %s3558_s3 }
   0x3   :  { %3578 = sst [smem:[#allocation28_spill]] %s3559_s4 }
   0x4   :  { %3579 = sst [smem:[#allocation29_spill]] %s3563_s8 }
   0x5   :  { %3580 = sst [smem:[#allocation30_spill]] %s3565_s10 }
   0x6   :  { %3581 = sst [smem:[#allocation31_spill]] %s3567_s12 }
   0x7   :  { %3582 = sst [smem:[#allocation32_spill]] %s3568_s13 }
   0x8   :  { %3583 = sst [smem:[#allocation33_spill]] %s3569_s14 }
   0x9   :  { %19 = vsyncpa [#allocation3], 0 }
   0xa   :  { %21 = vsyncpa [#allocation3 + $0x1], 0 }
   0xb   :  { %22 = vsyncpa [#allocation6], 0 }
   0xc   :  { %24 = vsyncpa [#allocation6 + $0x1], 0 }
   0xd   :  { %25 = vsyncpa [#allocation9], 0 }
   0xe   :  { %26 = vsyncpa [#allocation12], 0 }
   0xf   :  { %27 = vsyncpa [#allocation4], 0 }
  0x10   :  { %29 = vsyncpa [#allocation4 + $0x1], 0  ;;  %s3152_s29 = smov 0   ;;  %s3154_s30 = smov 0  }
  0x11   :  { %s3156_s15 = smov 0   ;;  %s3158_s16 = smov 0  }
  0x12 LB: > { %3584 = sst [smem:[#allocation21_spill]] %s3055_s15  ;;  %s3176_s20 = sadd.s32 4294967295, %s3059_s16   ;;  %s3059_s16 = sphi %s3158_s16, %s3607_s16   ;;  %s3055_s15 = sphi %s3156_s15, %s3609_s15   ;;  %s3051_s30 = sphi %s3154_s30, %s3611_s30   ;;  %s3047_s29 = sphi %s3152_s29, %s3610_s29  }
  0x13   : > { %3585 = sst [smem:[#allocation22_spill]] %s3059_s16  ;;  %p2101_p0 = scmp.ge.s32.totalorder %s3059_s16, 1 }
  0x14   : > { %s3586_s2 = sld [smem:[#allocation26_spill]]  ;;  %p56_p1 = scmp.eq.s32.totalorder %s3176_s20, 0 }
  0x15   : > { %p370_p2 = scmp.lt.s32.totalorder %s3059_s16, 3  ;;  %s3061_s22 = smov [#allocation7]  }
  0x16   : > { %s383_s23 = sshll.u32 %s3061_s22, 4  ;;  %s3588_s3 = sld [smem:[#allocation27_spill]]  ;;  %s384_s23 = int_to_ptr.vmem [resolvable:$true] %s383_s23 }
  0x17   : > { %p3181_p3 = pnand %p2101_p0, %p370_p2  ;;  %s3590_s8 = sld [smem:[#allocation29_spill]] }
  0x18   : > { %s3062_s22 = smov [#allocation8]   ;;  %s3063_s14 = smov 192  }
  0x19   : > { %p2636_p4 = pneg %p3181_p3  ;;  %s3064_s13 = smov 12  }
  0x1a   : > { %s381_s19 = sshll.u32 %s3586_s2, 4  ;;  %s398_s2 = sshll.u32 %s3062_s22, 4  ;;  %s382_s19 = int_to_ptr.hbm [resolvable:$true] %s381_s19  ;;  %s399_s2 = int_to_ptr.vmem [resolvable:$true] %s398_s2 }
  0x1b   : > { %p3193_p6 = pnand %p2636_p4, %p56_p1  ;;  %s3065_s24 = smov [#allocation11]  }
  0x1c   : > { %s396_s26 = sshll.u32 %s3588_s3, 4  ;;  %s432_s25 = sshll.u32 %s3065_s24, 4  ;;  %s397_s26 = int_to_ptr.hbm [resolvable:$true] %s396_s26  ;;  %s433_s25 = int_to_ptr.vmem [resolvable:$true] %s432_s25 }
  0x1d   : > { %s430_s18 = sshll.u32 %s3590_s8, 4  ;;  %s3591_s4 = sld [smem:[#allocation28_spill]]  ;;  %s431_s18 = int_to_ptr.hbm [resolvable:$true] %s430_s18 }
  0x1e   : > { %2639 = dma.hbm_to_vmem [thread:$0]  (!%p3193_p6), %s382_s19, 3072, %s384_s23, [#allocation6], %s3063_s14, %s3063_s14, %s3064_s13  }
  0x1f   : > { %2642 = dma.hbm_to_vmem [thread:$0]  (!%p3193_p6), %s397_s26, 48, %s399_s2, [#allocation9]  }
  0x20   : > { %s3066_s17 = smov 256   ;;  %s3067_s22 = smov 16  }
  0x21   : > { %2648 = dma.hbm_to_vmem [thread:$0]  (!%p3193_p6), %s431_s18, 4096, %s433_s25, [#allocation12], %s3066_s17, %s3066_s17, %s3067_s22  }
  0x22   : > { %s3068_s13 = smov [#allocation10]   ;;  %s3069_s14 = smov 64  }
  0x23   : > { %s407_s28 = sshll.u32 %s3591_s4, 4  ;;  %s409_s2 = sshll.u32 %s3068_s13, 4  ;;  %s408_s28 = int_to_ptr.hbm [resolvable:$true] %s407_s28  ;;  %s410_s2 = int_to_ptr.vmem [resolvable:$true] %s409_s2 }
  0x24   : > { %s3070_s3 = smov 4   ;;  %s3592_s10 = sld [smem:[#allocation30_spill]] }
  0x25   : > { %2645 = dma.hbm_to_vmem [thread:$0]  (!%p3193_p6), %s408_s28, 1024, %s410_s2, [#allocation9], %s3069_s14, %s3069_s14, %s3070_s3  }
  0x26   : > { %s3071_s26 = smov [#allocation13]   ;;  %s2100_s24 = sadd.s32 4294967294, %s3059_s16  }
  0x27   : > { %s449_s18 = sshll.u32 %s3071_s26, 4  ;;  %s3218_s25 = sadd.s32 1, %s3059_s16   ;;  %s450_s18 = int_to_ptr.vmem [resolvable:$true] %s449_s18 }
  0x28   : > { %3593 = sst [smem:[#allocation23_spill]] %s3218_s25  ;;  %s42_s17 = sadd.s32 1, %s3055_s15 }
  0x29   : > { %s39_s28 = ssub.s32 %s3059_s16, %s3218_s25  ;;  %p49_p7 = scmp.ne.s32.totalorder %s3055_s15, %s3051_s30 }
  0x2a   : > { %s447_s23 = sshll.u32 %s3592_s10, 4  ;;  %p40_p8 = scmp.eq.s32.totalorder %s39_s28, 0  ;;  %s448_s23 = int_to_ptr.hbm [resolvable:$true] %s447_s23 }
  0x2b   : > { %2651 = dma.hbm_to_vmem [thread:$0]  (!%p3193_p6), %s448_s23, 4096, %s450_s18, [#allocation12], %s3069_s14, %s3069_s14, %s3070_s3  }
  0x2c   : > { %p50_p9 = scmp.eq.s32.totalorder %s3059_s16, 0  ;;  %p55_p10 = scmp.ne.s32.totalorder %s3051_s30, %s3047_s29 }
  0x2d   : > { %p357_p11 = scmp.eq.s32.totalorder %s3176_s20, 1  ;;  %p363_p2 = scmp.eq.s32.totalorder %s2100_s24, 1 }
  0x2e   : > { %s3230_s22 = scalar_select %p40_p8, %s3055_s15, %s42_s17  }
  0x2f   : > { %p3232_p12 = por %p50_p9, %p49_p7  ;;  %p3238_p13 = por %p56_p1, %p55_p10 }
  0x30   : > { %3594 = sst [smem:[#allocation24_spill]] %s3230_s22  ;;  %p3242_p0 = por %p357_p11, %p49_p7 }
  0x31   : > { %p2668_p4 = scmp.lt.s32.totalorder %s3059_s16, 2  ;;  %s3248_s14 = sand.u32 1, %s3055_s15  }
  0x32   : > { %p3250_p6 = por %p363_p2, %p55_p10  ;;  %s2108_s12 = sshll.u32 %s3248_s14, 2 }
  0x33   : > { %s2109_s19 = sshll.u32 %s3059_s16, 2  ;;  %s476_s28 = scalar_lea.vmem [#allocation2], %s2108_s12 }
  0x34   : > { %s3598_s3 = scalar_select %p3250_p6, 1, 0 }
  0x35   : > { %s480_s18 = scalar_lea.hbm %s3555_s0, %s2109_s19  ;;  %s484_s4 = sshll.u32 %s476_s28, 4  ;;  %s485_s4 = int_to_ptr.vmem [resolvable:$true] %s484_s4 }
  0x36   : > { %3599 = sst [smem:[#allocation25_spill]] %s3598_s3  ;;  %s482_s17 = sshll.u32 %s480_s18, 4  ;;  %s483_s17 = int_to_ptr.hbm [resolvable:$true] %s482_s17 }
  0x37   : > { %p3261_p7 = pnand %p2668_p4, %p3232_p12  ;;  %s491_s8 = sand.u32 1, %s3059_s16  }
  0x38   : > { %s497_s15 = scalar_lea.hbm %s3556_s1, %s3059_s16  ;;  %s473_s25 = scalar_lea.sflag [#allocation3], %s3248_s14 }
  0x39   : > { %s2917_s23 = sshra.s32 %s483_s17, 4  ;;  %p2921_p9 = pneg %p3261_p7  ;;  %s2918_s23 = int_to_ptr.hbm [resolvable:$true] %s2917_s23 }
  0x3a   : > { %s2919_s19 = scalar_lea.hbm %s2918_s23, 4  ;;  %s2924_s26 = scalar_lea.hbm %s3555_s0, 8 }
  0x3b   : > { %p2920_p8 = scmp.ne.s32.totalorder %s2918_s23, %s2919_s19  ;;  %p2925_p12 = scmp.lt.s32.totalorder %s2918_s23, %s3555_s0 }
  0x3c   : > { %p2926_p2 = scmp.lt.s32.totalorder %s2924_s26, %s2919_s19 }
  0x3d   : > { %p2922_p10 = pnand %p2921_p9, %p2920_p8 }
  0x3e   : > { %p2927_p4 = por %p2926_p2, %p2925_p12 }
  0x3f   : > { %p2923_p11 = pneg %p2922_p10 }
  0x41   : > { %p2928_p5 = pnand %p2927_p4, %p2923_p11 }
  0x43   : > { %2931 = shalt.err (!%p2928_p5)
}
  0x44   : > { %2655 = dma.hbm_to_vmem [thread:$0]  (!%p3261_p7), %s483_s17, 64, %s485_s4, %s473_s25  }
  0x45   : > { %s499_s10 = sshll.u32 %s497_s15, 4  ;;  %s494_s22 = scalar_lea.vmem [#allocation5], %s3248_s14  ;;  %s500_s10 = int_to_ptr.hbm [resolvable:$true] %s499_s10 }
  0x46   : > { %s501_s16 = sshll.u32 %s494_s22, 4  ;;  %s492_s13 = scalar_lea.sflag [#allocation6], %s491_s8  ;;  %s502_s16 = int_to_ptr.vmem [resolvable:$true] %s501_s16 }
  0x47   : > { %s2947_s12 = sshra.s32 %s500_s10, 4  ;;  %s2954_s26 = scalar_lea.hbm %s3556_s1, 2  ;;  %s2948_s12 = int_to_ptr.hbm [resolvable:$true] %s2947_s12 }
  0x48   : > { %s2949_s3 = scalar_lea.hbm %s2948_s12, 1  ;;  %p2955_p5 = scmp.lt.s32.totalorder %s2948_s12, %s3556_s1 }
  0x49   : > { %p2950_p8 = scmp.ne.s32.totalorder %s2948_s12, %s2949_s3  ;;  %p2956_p12 = scmp.lt.s32.totalorder %s2954_s26, %s2949_s3 }
  0x4b   : > { %p2952_p10 = pnand %p2950_p8, %p2921_p9  ;;  %p2957_p2 = por %p2956_p12, %p2955_p5 }
  0x4d   : > { %p2953_p11 = pneg %p2952_p10 }
  0x4f   : > { %p2958_p4 = pnand %p2957_p2, %p2953_p11 }
  0x51   : > { %2961 = shalt.err (!%p2958_p4)
}
  0x52   : > { %2658 = dma.hbm_to_vmem [thread:$0]  (!%p3261_p7), %s500_s10, 16, %s502_s16, %s492_s13  }
  0x53   : > { %510 = sbr.rel (%p3181_p3) target bundleno = 2349 (0x92d), region = 76  ;;  %s3299_s8 = sand.u32 (!%p3181_p3), 1, %s3051_s30  }
  0x54   : > { %s2111_s15 = sshll.u32 (!%p3181_p3), %s3299_s8, 2  ;;  %s513_s25 = scalar_lea.sflag (!%p3181_p3), [#allocation3], %s3299_s8 }
  0x55   : > { %s3305_s14 = scalar_lea.vmem (!%p3181_p3), [#allocation2], %s2111_s15 }
  0x58   : > { %3022 = dma.done.wait (%p3238_p13), %s513_s25, 64  }
  0x59   : > { %3024 = vsyncadd (%p3238_p13), %s513_s25, 4294967232  ;;  %s522_s16 = sand.u32 1, %s3176_s20   ;;  %s525_s3 = scalar_lea.vmem [#allocation5], %s3299_s8 }
  0x5a   : > { %s523_s21 = scalar_lea.sflag [#allocation6], %s522_s16 }
  0x5b   : > { %3026 = dma.done.wait (%p3238_p13), %s523_s21, 16  }
  0x5c   : > { %3028 = vsyncadd (%p3238_p13), %s523_s21, 4294967280 }
  0x5d   : > { %3030 = dma.done.wait (%p56_p1), [#allocation6], 3072  }
  0x5e   : > { %3032 = vsyncadd (%p56_p1), [#allocation6], 4294964224 }
  0x5f   : > { %3034 = dma.done.wait (%p56_p1), [#allocation9], 1072  }
  0x60   : > { %3036 = vsyncadd (%p56_p1), [#allocation9], 4294966224 }
  0x61   : > { %3038 = dma.done.wait (%p56_p1), [#allocation12], 8192  }
  0x62   : > { %3040 = vsyncadd (%p56_p1), [#allocation12], 4294959104  ;;  %v2204_v0 = vld [vmem:[#allocation7 + $0xa8] sm:$0xf]  ;;  %v2536_v1 = vld [vmem:[#allocation7 + $0xb0] sm:$0xf0] }
  0x63   : > { %v2535_v2 = vld [vmem:[#allocation7 + $0xac] sm:$0xf]  ;;  %v2205_v3 = vor.u32 %v2536_v1, %v2204_v0  ;;  %v2206_v4 = vld [vmem:[#allocation7 + $0xb4] sm:$0xf0]  ;;  %v2192_v5 = vld [vmem:[#allocation7 + $0x90] sm:$0xf] }
  0x64   : > { %v2533_v6 = vld [vmem:[#allocation7 + $0x98] sm:$0xf0]  ;;  %v2209_v7 = vor.u32 %v2535_v2, %v2206_v4  ;;  %v2532_v8 = vld [vmem:[#allocation7 + $0x94] sm:$0xf]  ;;  %v2194_v9 = vld [vmem:[#allocation7 + $0x9c] sm:$0xf0] }
  0x65   : > { %773 = vmatpush.bf16.msra.mxu0 %v2205_v3  ;;  %v2193_v10 = vor.u32 %v2533_v6, %v2192_v5  ;;  %v2197_v11 = vor.u32 %v2532_v8, %v2194_v9  ;;  %v2180_v12 = vld [vmem:[#allocation7 + $0x78] sm:$0xf]  ;;  %v2530_v13 = vld [vmem:[#allocation7 + $0x80] sm:$0xf0]  ;;  %v2529_v14 = vld [vmem:[#allocation7 + $0x7c] sm:$0xf] }
  0x66   : > { %786 = vmatpush.bf16.msra.mxu1 %v2209_v7  ;;  %v2182_v15 = vld [vmem:[#allocation7 + $0x84] sm:$0xf0]  ;;  %v2181_v16 = vor.u32 %v2530_v13, %v2180_v12  ;;  %v2168_v18 = vld [vmem:[#allocation7 + $0x60] sm:$0xf]  ;;  %v2527_v19 = vld [vmem:[#allocation7 + $0x68] sm:$0xf0] }
  0x67   : > { %v2185_v17 = vor.u32 %v2529_v14, %v2182_v15  ;;  %v2526_v20 = vld [vmem:[#allocation7 + $0x64] sm:$0xf]  ;;  %v2170_v21 = vld [vmem:[#allocation7 + $0x6c] sm:$0xf0]  ;;  %v2169_v22 = vor.u32 %v2527_v19, %v2168_v18  ;;  %v2537_v24 = vld [vmem:[#allocation7 + $0xb8] sm:$0xf0] }
  0x68   : > { %v2212_v23 = vld [vmem:[#allocation7 + $0xb0] sm:$0xf]  ;;  %v2200_v25 = vld [vmem:[#allocation7 + $0x98] sm:$0xf]  ;;  %v2173_v26 = vor.u32 %v2526_v20, %v2170_v21  ;;  %v2156_v27 = vld [vmem:[#allocation7 + $0x48] sm:$0xf] }
  0x69   : > { %774 = vmatpush.bf16.msra.mxu0 %v2193_v10  ;;  %v2524_v28 = vld [vmem:[#allocation7 + $0x50] sm:$0xf0]  ;;  %v2213_v29 = vor.u32 %v2537_v24, %v2212_v23  ;;  %v2534_v30 = vld [vmem:[#allocation7 + $0xa0] sm:$0xf0]  ;;  %v2523_v31 = vld [vmem:[#allocation7 + $0x4c] sm:$0xf] }
  0x6a   : > { %787 = vmatpush.bf16.msra.mxu1 %v2197_v11  ;;  %v2158_v32 = vld [vmem:[#allocation7 + $0x54] sm:$0xf0]  ;;  %v2201_v33 = vor.u32 %v2534_v30, %v2200_v25  ;;  %v2157_v34 = vor.u32 %v2524_v28, %v2156_v27  ;;  %v2144_v35 = vld [vmem:[#allocation7 + $0x30] sm:$0xf]  ;;  %v2188_v36 = vld [vmem:[#allocation7 + $0x80] sm:$0xf] }
  0x6b   : > { %799 = vmatpush.bf16.msra.mxu2 %v2213_v29  ;;  %v2531_v37 = vld [vmem:[#allocation7 + $0x88] sm:$0xf0]  ;;  %v2161_v38 = vor.u32 %v2523_v31, %v2158_v32  ;;  %v2521_v39 = vld [vmem:[#allocation7 + $0x38] sm:$0xf0]  ;;  %v2520_v40 = vld [vmem:[#allocation7 + $0x34] sm:$0xf] }
  0x6c   : > { %v2146_v41 = vld [vmem:[#allocation7 + $0x3c] sm:$0xf0]  ;;  %v2189_v42 = vor.u32 %v2531_v37, %v2188_v36  ;;  %v2145_v43 = vor.u32 %v2521_v39, %v2144_v35  ;;  %v2176_v44 = vld [vmem:[#allocation7 + $0x68] sm:$0xf]  ;;  %v2528_v45 = vld [vmem:[#allocation7 + $0x70] sm:$0xf0] }
  0x6d   : > { %775 = vmatpush.bf16.msra.mxu0 %v2181_v16  ;;  %v2149_v46 = vor.u32 %v2520_v40, %v2146_v41  ;;  %v2132_v47 = vld [vmem:[#allocation7 + $0x18] sm:$0xf]  ;;  %v2518_v48 = vld [vmem:[#allocation7 + $0x20] sm:$0xf0]  ;;  %v2517_v49 = vld [vmem:[#allocation7 + $0x1c] sm:$0xf]  ;;  %v2177_v51 = vor.u32 %v2528_v45, %v2176_v44 }
  0x6e   : > { %788 = vmatpush.bf16.msra.mxu1 %v2185_v17  ;;  %v2134_v50 = vld [vmem:[#allocation7 + $0x24] sm:$0xf0]  ;;  %v2133_v52 = vor.u32 %v2518_v48, %v2132_v47  ;;  %v2164_v53 = vld [vmem:[#allocation7 + $0x50] sm:$0xf]  ;;  %v2525_v54 = vld [vmem:[#allocation7 + $0x58] sm:$0xf0] }
  0x6f   : > { %800 = vmatpush.bf16.msra.mxu2 %v2201_v33  ;;  %v2137_v55 = vor.u32 %v2517_v49, %v2134_v50  ;;  %v2120_v56 = vld [vmem:[#allocation7] sm:$0xf]  ;;  %v2515_v57 = vld [vmem:[#allocation7 + $0x8] sm:$0xf0]  ;;  %v2514_v58 = vld [vmem:[#allocation7 + $0x4] sm:$0xf]  ;;  %v2165_v60 = vor.u32 %v2525_v54, %v2164_v53 }
  0x70   : > { %v2122_v59 = vld [vmem:[#allocation7 + $0xc] sm:$0xf0]  ;;  %v2121_v61 = vor.u32 %v2515_v57, %v2120_v56  ;;  %v2152_v62 = vld [vmem:[#allocation7 + $0x38] sm:$0xf]  ;;  %v2522_v63 = vld [vmem:[#allocation7 + $0x40] sm:$0xf0] }
  0x71   : > { %776 = vmatpush.bf16.msra.mxu0 %v2169_v22  ;;  %v2125_v0 = vor.u32 %v2514_v58, %v2122_v59  ;;  %v2153_v1 = vor.u32 %v2522_v63, %v2152_v62  ;;  %v3330_v2 = vld [vmem:[%s3305_s14] sm:$0xf]  ;;  %v2140_v3 = vld [vmem:[#allocation7 + $0x20] sm:$0xf]  ;;  %v2519_v4 = vld [vmem:[#allocation7 + $0x28] sm:$0xf0] }
  0x72   : > { %789 = vmatpush.bf16.msra.mxu1 %v2173_v26  ;;  %v2141_v5 = vor.u32 %v2519_v4, %v2140_v3  ;;  %v2128_v6 = vld [vmem:[#allocation7 + $0x8] sm:$0xf]  ;;  %v2516_v7 = vld [vmem:[#allocation7 + $0x10] sm:$0xf0]  ;;  %v637_v9 = vld [vmem:[#allocation8] sm:$0x7] }
  0x73   : > { %801 = vmatpush.bf16.msra.mxu2 %v2189_v42  ;;  %v2129_v8 = vor.u32 %v2516_v7, %v2128_v6  ;;  %v639_v10 = vperm.slane %v637_v9, 0  ;;  %v640_v11 = vperm.slane %v637_v9, 1  ;;  %vm820_vm0 = vcmask 261120   ;;  %s3072_s27 = smov 64   ;;  %s3073_s17 = smov 96  }
  0x74   : > { %s3074_s24 = smov 32   ;;  %v641_v25 = vperm.slane %v637_v9, 2  ;;  %vm856_vm1 = vcmask 1043456   ;;  %vm840_vm2 = vcmask 64512   ;;  %vm1059_vm3 = vcmask 523264   ;;  %s2511_s25 = sshll.u32 %s3176_s20, 2 }
  0x75   : > { %777 = vmatpush.bf16.msra.mxu0 %v2157_v34  ;;  %v602_v34 = vld [vmem:[%s525_s3] sm:$0x1]  ;;  %vm1061_vm4 = vcmask 785408   ;;  %s3601_s21 = sld [smem:[#allocation31_spill]]  ;;  %s599_s20 = scalar_lea.vmem [#allocation14], %s2111_s15 }
  0x76   : > { %790 = vmatpush.bf16.msra.mxu1 %v2161_v38  ;;  %v603_v35 = vsub.f32 1.0, %v602_v34  ;;  %s3603_s10 = sld [smem:[#allocation33_spill]]  ;;  %s1961_s13 = sshll.u32 %s599_s20, 4  ;;  %s1962_s13 = int_to_ptr.vmem [resolvable:$true] %s1961_s13 }
  0x77   : > { %802 = vmatpush.bf16.msra.mxu2 %v2177_v51  ;;  %s1949_s23 = scalar_lea.sflag [#allocation4], %s3299_s8 }
  0x78   : > { %v604_v36 = vmul.f32 -10000.0, %v603_v35 }
  0x79   : > { %778 = vmatpush.bf16.msra.mxu0 %v2145_v43 }
  0x7a   : > { %791 = vmatpush.bf16.msra.mxu1 %v2149_v46  ;;  %v815_v37 = vperm.slane %v604_v36, 0 }
  0x7b   : > { %803 = vmatpush.bf16.msra.mxu2 %v2165_v60 }
  0x7c   : > { %s1959_s22 = scalar_lea.hbm %s3603_s10, %s2511_s25  ;;  %s2997_s25 = scalar_lea.hbm %s3603_s10, 8 }
  0x7d   : > { %779 = vmatpush.bf16.msra.mxu0 %v2133_v52  ;;  %s1963_s12 = sshll.u32 %s1959_s22, 4  ;;  %s1964_s12 = int_to_ptr.hbm [resolvable:$true] %s1963_s12 }
  0x7e   : > { %792 = vmatpush.bf16.msra.mxu1 %v2137_v55  ;;  %s2991_s19 = sshra.s32 %s1964_s12, 4  ;;  %s2992_s19 = int_to_ptr.hbm [resolvable:$true] %s2991_s19 }
  0x7f   : > { %804 = vmatpush.bf16.msra.mxu2 %v2153_v1  ;;  %s2993_s26 = scalar_lea.hbm %s2992_s19, 4  ;;  %p2998_p7 = scmp.lt.s32.totalorder %s2992_s19, %s3603_s10 }
  0x80   : > { %p2994_p1 = scmp.ne.s32.totalorder %s2992_s19, %s2993_s26  ;;  %p2999_p9 = scmp.lt.s32.totalorder %s2997_s25, %s2993_s26 }
  0x81   : > { %780 = vmatpush.bf16.msra.mxu0 %v2121_v61 }
  0x82   : > { %793 = vmatpush.bf16.msra.mxu1 %v2125_v0  ;;  %p2995_p3 = pnand %p2994_p1, %p3242_p0  ;;  %p3000_p8 = por %p2999_p9, %p2998_p7 }
  0x83   : > { %805 = vmatpush.bf16.msra.mxu2 %v2141_v5 }
  0x84   : > { %781 = vmatmul.bf16.vlgmr.msra.gmra.mxu0 %v3330_v2  ;;  %p2996_p13 = pneg %p2995_p3 }
  0x85   : > { %794 = vmatmul.bf16.vlgmr.msra.gmra.mxu1 %v3330_v2 }
  0x86   : > { %p3001_p10 = pnand %p3000_p8, %p2996_p13 }
  0x87   : > { %806 = vmatpush.bf16.msra.mxu2 %v2129_v8 }
  0x8a   : > { %807 = vmatmul.bf16.vlgmr.msra.gmra.mxu2 %v3330_v2 }
 0x101   : > { %v782_v12 = vpop.f32.mrf.mxu0 }
 0x102   : > { %v783_v13 = vadd.f32 %v782_v12, %v639_v10  ;;  %v795_v14 = vpop.f32.mrf.mxu1 }
 0x103   : > { %v796_v15 = vadd.f32 %v795_v14, %v640_v11 }
 0x105   : > { %v812_v16 = vpack.c.bf16 %v796_v15, %v783_v13 }
 0x107   : > { %v818_v17 = vunpack.c.h.b16 %v812_v16  ;;  %v873_v22 = vunpack.c.l.b16 %v812_v16 }
 0x109   : > { %v784_v18 = vpop.f32.mrf.mxu0  ;;  %v819_v19 = vpack.c.b16 %v818_v17, %v818_v17  ;;  %v874_v23 = vpack.c.b16 %v873_v22, %v873_v22 }
 0x10a   : > { %v797_v20 = vpop.f32.mrf.mxu1 }
 0x10b   : > { %936 = vrot.lane.b32.xlu2 %v819_v19, %s3072_s27  ;;  %877 = vrot.lane.b32.xlu1 %v819_v19, %s3073_s17  ;;  %v825_v21 = vsel %vm820_vm0, %v819_v19, 0 }
 0x10c   : > { %834 = vmatpush.bf16.xpose.msra.mxu3 %v825_v21 }
 0x10d   : > { %v808_v24 = vpop.f32.mrf.mxu2 }
 0x10e   : > { %v809_v26 = vadd.f32 %v808_v24, %v641_v25 }
 0x110   : > { %v813_v28 = vpack.c.bf16 %v809_v26, %v809_v26 }
 0x112   : > { %v858_v29 = vsel %vm856_vm1, %v813_v28, 0  ;;  %v911_v7 = vunpack.c.l.b16 %v813_v28 }
 0x113   : > { %992 = vrot.lane.b32.xlu2 %v819_v19, %s3074_s24  ;;  %875 = vrot.lane.b32.xlu1 %v874_v23, %s3073_s17 }
 0x114   : > { %2214 = vmatmul.msk.bf16.vlgmr.msra.gmra.mxu3 %vm820_vm0, %v812_v16  ;;  %v912_v8 = vpack.c.b16 %v911_v7, %v911_v7  ;;  %v3075_v7 = vmov 128.0  }
 0x115   : > { %v810_v27 = vpop.f32.mrf.mxu2  ;;  %867 = vmatpush.bf16.msrb.mxu3 %v858_v29 }
 0x11b   : > { %990 = vrot.lane.b32.xlu1 %v874_v23, %s3074_s24 }
 0x165   : > { %v937_v30 = vpop.permute.xlu2 %936 }
 0x166   : > { %v942_v31 = vsel %vm820_vm0, %v937_v30, 0 }
 0x167   : > { %951 = vmatpush.bf16.xpose.msrb.mxu2 %v942_v31 }
 0x16d   : > { %v993_v50 = vpop.permute.xlu2 %992 }
 0x16e   : > { %v998_v52 = vsel %vm820_vm0, %v993_v50, 0  ;;  %v2543_v50 = vld [vmem:[#allocation10 + $0x28] sm:$0xff] }
 0x17d   : > { %v878_v32 = vpop.permute.xlu1 %877 }
 0x17e   : > { %v883_v33 = vsel %vm820_vm0, %v878_v32, 0 }
 0x17f   : > { %892 = vmatpush.bf16.xpose.msra.mxu3 %v883_v33 }
 0x185   : > { %v876_v54 = vpop.permute.xlu1 %875 }
 0x18d   : > { %v991_v55 = vpop.permute.xlu1 %990 }
 0x197   : > { %v836_v38 = vpop.f32.mrf.mxu3 }
 0x198   : > { %v837_v39 = vadd.f32 %v836_v38, %v815_v37 }
 0x19a   : > { %v841_v40 = vsel %vm840_vm2, %v837_v39, -inf }
 0x19b   : > { %842 = vmax.xlane.f32.xlu0 %v841_v40 }
 0x19f   : > { %v838_v41 = vpop.f32.mrf.mxu3 }
 0x20e   : > { %v843_v42 = vpop.xlane.xlu0 %842 }
 0x20f   : > { %v844_v43 = vsub.f32 %v837_v39, %v843_v42 }
 0x211   : > { %v845_v44 = vmul.f32 1.442695, %v844_v43 }
 0x213   : > { %2729 = vpow2.f32 %v845_v44 }
 0x219   : > { %v2730_v45 = vpop.eup %2729 }
 0x21a   : > { %v847_v46 = vsel %vm840_vm2, %v2730_v45, 0.0 }
 0x21b   : > { %848 = vadd.xlane.f32.xlu0 %v847_v46 }
 0x22f   : > { %934 = vrot.lane.b32.xlu0 %v874_v23, %s3072_s27 }
 0x28e   : > { %v849_v47 = vpop.xlane.xlu0 %848 }
 0x28f   : > { %2731 = vrcp.f32 %v849_v47 }
 0x295   : > { %v2732_v48 = vpop.eup %2731 }
 0x296   : > { %v851_v49 = vmul.f32 %v2732_v48, %v2730_v45  ;;  %v2545_v48 = vld [vmem:[#allocation10 + $0x38] sm:$0xff] }
 0x297   : > { %1132 = vmatpush.bf16.msrb.mxu1 %v2545_v48 }
 0x298   : > { %v852_v51 = vpack.c.bf16 %v851_v49, %v851_v49  ;;  %v2544_v49 = vld [vmem:[#allocation10 + $0x30] sm:$0xff] }
 0x29a   : > { %2215 = vmatmul.msk.bf16.vlgmr.msrb.gmra.mxu3 %vm840_vm2, %v852_v51  ;;  %v2542_v51 = vld [vmem:[#allocation10 + $0x20] sm:$0xff] }
 0x29b   : > { %1007 = vmatpush.bf16.xpose.msrb.mxu3 %v998_v52  ;;  %1133 = vmatpush.bf16.msrb.mxu1 %v2544_v49  ;;  %v2541_v52 = vld [vmem:[#allocation10 + $0x18] sm:$0xff]  ;;  %v2567_v49 = vld [vmem:[#allocation11 + $0xac] sm:$0xf] }
 0x29f   : > { %1134 = vmatpush.bf16.msrb.mxu1 %v2543_v50  ;;  %v2346_v50 = vld [vmem:[#allocation11 + $0xb8] sm:$0xf0] }
 0x2a1   : > { %v935_v53 = vpop.permute.xlu0 %934 }
 0x2a2   : > { %2218 = vmatmul.msk.bf16.vlgmr.msrb.gmra.mxu2 %vm820_vm0, %v935_v53  ;;  %v2540_v53 = vld [vmem:[#allocation10 + $0x10] sm:$0xff] }
 0x2a3   : > { %1135 = vmatpush.bf16.msrb.mxu1 %v2542_v51  ;;  %v2349_v51 = vor.u32 %v2567_v49, %v2346_v50 }
 0x2a7   : > { %1136 = vmatpush.bf16.msrb.mxu1 %v2541_v52  ;;  %v2320_v52 = vld [vmem:[#allocation11 + $0x80] sm:$0xf] }
 0x2aa   : > { %2216 = vmatmul.msk.bf16.vlgmr.msra.gmra.mxu3 %vm820_vm0, %v876_v54  ;;  %v2539_v54 = vld [vmem:[#allocation10 + $0x8] sm:$0xff] }
 0x2ab   : > { %1137 = vmatpush.bf16.msrb.mxu1 %v2540_v53  ;;  %v2564_v53 = vld [vmem:[#allocation11 + $0x8c] sm:$0xf0] }
 0x2af   : > { %1138 = vmatpush.bf16.msrb.mxu1 %v2539_v54  ;;  %v2562_v54 = vld [vmem:[#allocation11 + $0x84] sm:$0xf] }
 0x2ba   : > { %2220 = vmatmul.msk.bf16.vlgmr.msrb.gmra.mxu3 %vm820_vm0, %v991_v55  ;;  %v2538_v55 = vld [vmem:[#allocation10] sm:$0xff] }
 0x2bb   : > { %1139 = vmatpush.bf16.msrb.mxu1 %v2538_v55  ;;  %v2321_v55 = vor.u32 %v2564_v53, %v2320_v52 }
 0x31d   : > { %v3355_v56 = vpop.f32.mrf.mxu3 }
 0x325   : > { %v871_v57 = vpop.f32.mrf.mxu3  ;;  %v953_v58 = vpop.f32.mrf.mxu2 }
 0x326   : > { %v954_v59 = vadd.f32 %v953_v58, %v815_v37 }
 0x328   : > { %v957_v60 = vsel %vm840_vm2, %v954_v59, -inf }
 0x329   : > { %958 = vmax.xlane.f32.xlu1 %v957_v60 }
 0x32d   : > { %v894_v61 = vpop.f32.mrf.mxu3  ;;  %v955_v62 = vpop.f32.mrf.mxu2 }
 0x32e   : > { %v895_v63 = vadd.f32 %v894_v61, %v815_v37 }
 0x330   : > { %v898_v0 = vsel %vm840_vm2, %v895_v63, -inf }
 0x331   : > { %899 = vmax.xlane.f32.xlu2 %v898_v0  ;;  %v2723_v0 = vld [vmem:[%s3560_s5] ss:$0 sm:$0xff] }
 0x335   : > { %v896_v1 = vpop.f32.mrf.mxu3 }
 0x336   : > { %v1145_v1 = vunpack.c.l.bf16 %v3330_v2 }
 0x33d   : > { %v1009_v3 = vpop.f32.mrf.mxu3 }
 0x33e   : > { %v1010_v4 = vadd.f32 %v1009_v3, %v815_v37 }
 0x340   : > { %v1013_v5 = vsel %vm840_vm2, %v1010_v4, -inf }
 0x341   : > { %1014 = vmax.xlane.f32.xlu0 %v1013_v5 }
 0x345   : > { %v1011_v6 = vpop.f32.mrf.mxu3 }
 0x355   : > { %969 = vrot.lane.b32.xlu0 %v912_v8, %s3072_s27 }
 0x39c   : > { %v959_v9 = vpop.xlane.xlu1 %958 }
 0x39d   : > { %v960_v10 = vsub.f32 %v954_v59, %v959_v9  ;;  %v2574_v9 = vld [vmem:[#allocation11 + $0xe4] sm:$0xf] }
 0x39f   : > { %v961_v11 = vmul.f32 1.442695, %v960_v10 }
 0x3a1   : > { %2733 = vpow2.f32 %v961_v11  ;;  %v2370_v11 = vld [vmem:[#allocation11 + $0xf0] sm:$0xf0] }
 0x3a4   : > { %v900_v12 = vpop.xlane.xlu2 %899 }
 0x3a5   : > { %v901_v13 = vsub.f32 %v895_v63, %v900_v12  ;;  %v2376_v12 = vld [vmem:[#allocation11 + $0xe8] sm:$0xf] }
 0x3a7   : > { %v2734_v14 = vpop.eup %2733  ;;  %v902_v15 = vmul.f32 1.442695, %v901_v13  ;;  %v2577_v13 = vld [vmem:[#allocation11 + $0xf4] sm:$0xf0] }
 0x3a8   : > { %v963_v16 = vsel %vm840_vm2, %v2734_v14, 0.0 }
 0x3a9   : > { %2735 = vpow2.f32 %v902_v15  ;;  %964 = vadd.xlane.f32.xlu1 %v963_v16  ;;  %v2377_v15 = vor.u32 %v2577_v13, %v2376_v12  ;;  %v2575_v16 = vld [vmem:[#allocation11 + $0xec] sm:$0xf]  ;;  %v2288_v13 = vld [vmem:[#allocation11 + $0x40] sm:$0xf] }
 0x3af   : > { %v2736_v17 = vpop.eup %2735 }
 0x3b0   : > { %v904_v18 = vsel %vm840_vm2, %v2736_v17, 0.0 }
 0x3b1   : > { %905 = vadd.xlane.f32.xlu2 %v904_v18 }
 0x3b4   : > { %v1015_v19 = vpop.xlane.xlu0 %1014 }
 0x3b5   : > { %v1016_v20 = vsub.f32 %v1010_v4, %v1015_v19 }
 0x3b7   : > { %v1017_v21 = vmul.f32 1.442695, %v1016_v20 }
 0x3b9   : > { %2737 = vpow2.f32 %v1017_v21 }
 0x3bf   : > { %v2738_v22 = vpop.eup %2737 }
 0x3c0   : > { %v1019_v23 = vsel %vm840_vm2, %v2738_v22, 0.0 }
 0x3c1   : > { %1020 = vadd.xlane.f32.xlu1 %v1019_v23 }
 0x3c7   : > { %v970_v24 = vpop.permute.xlu0 %969 }
 0x3c8   : > { %v975_v25 = vsel %vm856_vm1, %v970_v24, 0 }
 0x3c9   : > { %913 = vrot.lane.b32.xlu2 %v912_v8, %s3073_s17  ;;  %984 = vmatpush.bf16.msra.mxu2 %v975_v25 }
 0x3da   : > { %1025 = vrot.lane.b32.xlu1 %v912_v8, %s3074_s24  ;;  %v2368_v8 = vld [vmem:[#allocation11 + $0xe0] sm:$0xf] }
 0x41c   : > { %v965_v26 = vpop.xlane.xlu1 %964 }
 0x41d   : > { %2739 = vrcp.f32 %v965_v26 }
 0x423   : > { %v2740_v27 = vpop.eup %2739 }
 0x424   : > { %v967_v28 = vmul.f32 %v2740_v27, %v2734_v14  ;;  %v906_v29 = vpop.xlane.xlu2 %905  ;;  %v2373_v14 = vor.u32 %v2574_v9, %v2370_v11  ;;  %v2314_v11 = vld [vmem:[#allocation11 + $0x78] sm:$0xf0] }
 0x425   : > { %2741 = vrcp.f32 %v906_v29  ;;  %v2572_v29 = vld [vmem:[#allocation11 + $0xcc] sm:$0xf0] }
 0x426   : > { %v968_v30 = vpack.c.bf16 %v967_v28, %v967_v28  ;;  %1400 = vmatpush.bf16.msra.mxu3 %v2373_v14  ;;  %v2352_v28 = vld [vmem:[#allocation11 + $0xc0] sm:$0xf]  ;;  %v2556_v14 = vld [vmem:[#allocation11 + $0x4c] sm:$0xf0] }
 0x428   : > { %2219 = vmatmul.msk.bf16.vlgmr.msra.gmra.mxu2 %vm840_vm2, %v968_v30  ;;  %v2570_v30 = vld [vmem:[#allocation11 + $0xc4] sm:$0xf] }
 0x42b   : > { %v2742_v31 = vpop.eup %2741 }
 0x42c   : > { %v908_v32 = vmul.f32 %v2742_v31, %v2736_v17  ;;  %v914_v33 = vpop.permute.xlu2 %913  ;;  %v2378_v17 = vld [vmem:[#allocation11 + $0xf8] sm:$0xf0]  ;;  %v2353_v31 = vor.u32 %v2572_v29, %v2352_v28  ;;  %v2550_v28 = vld [vmem:[#allocation11 + $0x24] sm:$0xf] }
 0x42d   : > { %v919_v34 = vsel %vm856_vm1, %v914_v33, 0  ;;  %v2381_v2 = vor.u32 %v2575_v16, %v2378_v17  ;;  %v2360_v33 = vld [vmem:[#allocation11 + $0xc8] sm:$0xf]  ;;  %v2289_v16 = vor.u32 %v2556_v14, %v2288_v13  ;;  %v2290_v17 = vld [vmem:[#allocation11 + $0x50] sm:$0xf0] }
 0x42e   : > { %928 = vmatpush.bf16.msrb.mxu0 %v919_v34  ;;  %v909_v35 = vpack.c.bf16 %v908_v32, %v908_v32  ;;  %v2354_v32 = vld [vmem:[#allocation11 + $0xd0] sm:$0xf0]  ;;  %v2573_v34 = vld [vmem:[#allocation11 + $0xd4] sm:$0xf0] }
 0x42f   : > { %1426 = vmatpush.bf16.msra.mxu1 %v2381_v2  ;;  %v2296_v2 = vld [vmem:[#allocation11 + $0x48] sm:$0xf] }
 0x431   : > { %2217 = vmatmul.msk.bf16.vlgmr.msrb.gmra.mxu0 %vm840_vm2, %v909_v35  ;;  %v2357_v35 = vor.u32 %v2570_v30, %v2354_v32  ;;  %v2274_v30 = vld [vmem:[#allocation11 + $0x30] sm:$0xf0]  ;;  %v2553_v32 = vld [vmem:[#allocation11 + $0x34] sm:$0xf0] }
 0x433   : > { %1401 = vmatpush.bf16.msra.mxu3 %v2357_v35  ;;  %v2551_v35 = vld [vmem:[#allocation11 + $0x2c] sm:$0xf] }
 0x434   : > { %v1021_v36 = vpop.xlane.xlu1 %1020 }
 0x435   : > { %2743 = vrcp.f32 %v1021_v36  ;;  %v2361_v36 = vor.u32 %v2573_v34, %v2360_v33  ;;  %v2277_v33 = vor.u32 %v2550_v28, %v2274_v30 }
 0x436   : > { %2745 = vrcp.f32 %v3075_v7  ;;  %v2312_v7 = vld [vmem:[#allocation11 + $0x68] sm:$0xf] }
 0x43b   : > { %v2744_v37 = vpop.eup %2743 }
 0x43c   : > { %v1023_v38 = vmul.f32 %v2744_v37, %v2738_v22  ;;  %v2746_v18 = vpop.eup %2745  ;;  %v2571_v37 = vld [vmem:[#allocation11 + $0xcc] sm:$0xf] }
 0x43d   : > { %v1152_v19 = vmul.f32 128.0, %v2746_v18  ;;  %vm1156_vm5 = vweird.f32 %v2746_v18 }
 0x43e   : > { %v1024_v41 = vpack.c.bf16 %v1023_v38, %v1023_v38  ;;  %v2362_v38 = vld [vmem:[#allocation11 + $0xd8] sm:$0xf0] }
 0x43f   : > { %v1153_v20 = vsub.f32 1.0, %v1152_v19 }
 0x441   : > { %v1154_v21 = vmul.f32 %v2746_v18, %v1153_v20 }
 0x443   : > { %v1155_v22 = vadd.f32 %v2746_v18, %v1154_v21  ;;  %v2555_v21 = vld [vmem:[#allocation11 + $0x4c] sm:$0xf] }
 0x445   : > { %v3381_v23 = vsel %vm1156_vm5, %v2746_v18, %v1155_v22  ;;  %v2557_v18 = vld [vmem:[#allocation11 + $0x54] sm:$0xf0]  ;;  %v2298_v22 = vld [vmem:[#allocation11 + $0x58] sm:$0xf0] }
 0x446   : > { %v2297_v20 = vor.u32 %v2557_v18, %v2296_v2 }
 0x44c   : > { %v1026_v39 = vpop.permute.xlu1 %1025 }
 0x44d   : > { %v1031_v40 = vsel %vm856_vm1, %v1026_v39, 0  ;;  %v2365_v39 = vor.u32 %v2571_v37, %v2362_v38  ;;  %v2256_v37 = vld [vmem:[#allocation11] sm:$0xf] }
 0x44e   : > { %1040 = vmatpush.bf16.msra.mxu0 %v1031_v40  ;;  %v2336_v40 = vld [vmem:[#allocation11 + $0xa0] sm:$0xf] }
 0x44f   : > { %1427 = vmatpush.bf16.msra.mxu1 %v2365_v39  ;;  %v2548_v39 = vld [vmem:[#allocation11 + $0xc] sm:$0xf0] }
 0x451   : > { %2221 = vmatmul.msk.bf16.vlgmr.msra.gmra.mxu0 %vm840_vm2, %v1024_v41  ;;  %v2568_v41 = vld [vmem:[#allocation11 + $0xac] sm:$0xf0] }
 0x452   : > { %1413 = vmatpush.bf16.msrb.mxu0 %v2377_v15  ;;  %v2554_v15 = vld [vmem:[#allocation11 + $0x44] sm:$0xf] }
 0x453   : > { %1428 = vmatpush.bf16.msra.mxu1 %v2349_v51  ;;  %v2293_v19 = vor.u32 %v2554_v15, %v2290_v17  ;;  %v2600_v15 = vld [vmem:[#allocation13 + $0xb0] sm:$0xff] }
 0x456   : > { %1414 = vmatpush.bf16.msrb.mxu0 %v2361_v36  ;;  %v2282_v36 = vld [vmem:[#allocation11 + $0x38] sm:$0xf0] }
 0x457   : > { %v2285_v38 = vor.u32 %v2551_v35, %v2282_v36  ;;  %v2607_v35 = vld [vmem:[#allocation13 + $0xe8] sm:$0xff] }
 0x4ab   : > { %v986_v42 = vpop.f32.mrf.mxu2 }
 0x4ae   : > { %v930_v43 = vpop.f32.mrf.mxu0 }
 0x4af   : > { %1047 = vrot.lane.b32.xlu2 %v930_v43, %s3074_s24  ;;  %v2337_v43 = vor.u32 %v2568_v41, %v2336_v40  ;;  %v2546_v40 = vld [vmem:[#allocation11 + $0x4] sm:$0xf]  ;;  %v2258_v41 = vld [vmem:[#allocation11 + $0x10] sm:$0xf0] }
 0x4b3   : > { %v988_v44 = vpop.f32.mrf.mxu2 }
 0x4b4   : > { %v2338_v44 = vld [vmem:[#allocation11 + $0xb0] sm:$0xf0] }
 0x4b6   : > { %v932_v45 = vpop.f32.mrf.mxu0 }
 0x4b7   : > { %1051 = vrot.lane.b32.xlu2 %v986_v42, %s3072_s27  ;;  %v2566_v42 = vld [vmem:[#allocation11 + $0xa4] sm:$0xf]  ;;  %v2344_v45 = vld [vmem:[#allocation11 + $0xa8] sm:$0xf] }
 0x4ce   : > { %v1042_v46 = vpop.f32.mrf.mxu0 }
 0x4cf   : > { %1055 = vrot.lane.b32.xlu0 %v1042_v46, %s3073_s17  ;;  %v2569_v46 = vld [vmem:[#allocation11 + $0xb4] sm:$0xf0]  ;;  %s3602_s17 = sld [smem:[#allocation32_spill]] }
 0x4d0   : > { %v2345_v48 = vor.u32 %v2569_v46, %v2344_v45  ;;  %v2549_v45 = vld [vmem:[#allocation11 + $0x14] sm:$0xf0]  ;;  %v2547_v46 = vld [vmem:[#allocation11 + $0xc] sm:$0xf] }
 0x4d2   : > { %1415 = vmatpush.bf16.msrb.mxu0 %v2345_v48  ;;  %v2266_v48 = vld [vmem:[#allocation11 + $0x18] sm:$0xf0] }
 0x4d3   : > { %v2269_v49 = vor.u32 %v2547_v46, %v2266_v48  ;;  %v2591_v46 = vld [vmem:[#allocation13 + $0x68] sm:$0xff] }
 0x4d6   : > { %v1044_v47 = vpop.f32.mrf.mxu0 }
 0x4d7   : > { %v2341_v47 = vor.u32 %v2566_v42, %v2338_v44  ;;  %v2257_v42 = vor.u32 %v2548_v39, %v2256_v37  ;;  %v2264_v44 = vld [vmem:[#allocation11 + $0x8] sm:$0xf]  ;;  %v2584_v37 = vld [vmem:[#allocation13 + $0x30] sm:$0xff] }
 0x4d9   : > { %1402 = vmatpush.bf16.msra.mxu3 %v2341_v47  ;;  %v2265_v47 = vor.u32 %v2549_v45, %v2264_v44  ;;  %v2583_v45 = vld [vmem:[#allocation13 + $0x28] sm:$0xff] }
 0x509   : > { %v1048_v57 = vpop.permute.xlu2 %1047 }
 0x50a   : > { %v1058_v59 = vsel %vm820_vm0, %v3355_v56, %v1048_v57  ;;  %v2576_v56 = vld [vmem:[#allocation11 + $0xec] sm:$0xf0]  ;;  %v2322_v57 = vld [vmem:[#allocation11 + $0x90] sm:$0xf0] }
 0x50b   : > { %v2369_v10 = vor.u32 %v2576_v56, %v2368_v8  ;;  %v2561_v8 = vld [vmem:[#allocation11 + $0x74] sm:$0xf0] }
 0x50c   : > { %v2313_v9 = vor.u32 %v2561_v8, %v2312_v7  ;;  %v2601_v8 = vld [vmem:[#allocation13 + $0xb8] sm:$0xff] }
 0x50d   : > { %1387 = vmatpush.bf16.msrb.mxu2 %v2369_v10  ;;  %v2559_v10 = vld [vmem:[#allocation11 + $0x6c] sm:$0xf] }
 0x50e   : > { %v2317_v12 = vor.u32 %v2559_v10, %v2314_v11 }
 0x511   : > { %v1052_v58 = vpop.permute.xlu2 %1051  ;;  %1388 = vmatpush.bf16.msrb.mxu2 %v2353_v31  ;;  %v2280_v31 = vld [vmem:[#allocation11 + $0x28] sm:$0xf] }
 0x512   : > { %v1060_v60 = vsel %vm1059_vm3, %v1058_v59, %v1052_v58  ;;  %v2328_v58 = vld [vmem:[#allocation11 + $0x88] sm:$0xf]  ;;  %v2565_v59 = vld [vmem:[#allocation11 + $0x94] sm:$0xf0]  ;;  %v2281_v34 = vor.u32 %v2553_v32, %v2280_v31 }
 0x515   : > { %1389 = vmatpush.bf16.msrb.mxu2 %v2337_v43  ;;  %v2261_v43 = vor.u32 %v2546_v40, %v2258_v41  ;;  %v2598_v40 = vld [vmem:[#allocation13 + $0xa0] sm:$0xff] }
 0x516   : > { %v2606_v41 = vld [vmem:[#allocation13 + $0xe0] sm:$0xff] }
 0x519   : > { %1390 = vmatpush.bf16.msrb.mxu2 %v2321_v55 }
 0x541   : > { %v1056_v61 = vpop.permute.xlu0 %1055 }
 0x542   : > { %v1062_v62 = vsel %vm1061_vm4, %v1060_v60, %v1056_v61  ;;  %v2325_v60 = vor.u32 %v2562_v54, %v2322_v57  ;;  %v2329_v61 = vor.u32 %v2565_v59, %v2328_v58 }
 0x543   : > { %v1063_v63 = vpack.c.bf16 %v1062_v62, %v1062_v62  ;;  %v2563_v62 = vld [vmem:[#allocation11 + $0x8c] sm:$0xf] }
 0x544   : > { %1403 = vmatpush.bf16.msra.mxu3 %v2325_v60  ;;  %1416 = vmatpush.bf16.msrb.mxu0 %v2329_v61  ;;  %v2724_v60 = vld [vmem:[%s3561_s6] ss:$0 sm:$0xff] }
 0x545   : > { %1140 = vmatmul.bf16.vlgmr.msrb.gmra.mxu1 %v1063_v63  ;;  %v2330_v63 = vld [vmem:[#allocation11 + $0x98] sm:$0xf0] }
 0x548   : > { %1417 = vmatpush.bf16.msrb.mxu0 %v2313_v9 }
 0x54c   : > { %1418 = vmatpush.bf16.msrb.mxu0 %v2297_v20 }
 0x550   : > { %1419 = vmatpush.bf16.msrb.mxu0 %v2281_v34  ;;  %v2599_v34 = vld [vmem:[#allocation13 + $0xa8] sm:$0xff] }
 0x554   : > { %1420 = vmatpush.bf16.msrb.mxu0 %v2265_v47 }
 0x558   : > { %1889 = vmatpush.bf16.msra.mxu0 %v2601_v8 }
 0x55c   : > { %1890 = vmatpush.bf16.msra.mxu0 %v2600_v15 }
 0x560   : > { %1891 = vmatpush.bf16.msra.mxu0 %v2599_v34 }
 0x564   : > { %1892 = vmatpush.bf16.msra.mxu0 %v2598_v40  ;;  %v2594_v40 = vld [vmem:[#allocation13 + $0x80] sm:$0xff] }
 0x5c2   : > { %v1141_v3 = vpop.f32.mrf.mxu1 }
 0x5c3   : > { %v1142_v4 = vadd.f32 %v2723_v0, %v1141_v3  ;;  %v2333_v0 = vor.u32 %v2563_v62, %v2330_v63  ;;  %v2560_v3 = vld [vmem:[#allocation11 + $0x6c] sm:$0xf0] }
 0x5c4   : > { %v2725_v63 = vld [vmem:[%s3562_s7] ss:$0 sm:$0xff] }
 0x5c5   : > { %v1146_v5 = vadd.f32 %v1145_v1, %v1142_v4  ;;  %v2304_v1 = vld [vmem:[#allocation11 + $0x60] sm:$0xf]  ;;  %v2558_v4 = vld [vmem:[#allocation11 + $0x64] sm:$0xf]  ;;  %1429 = vmatpush.bf16.msra.mxu1 %v2333_v0 }
 0x5c7   : > { %1149 = vadd.xlane.f32.xlu2 %v1146_v5 }
 0x5c9   : > { %1430 = vmatpush.bf16.msra.mxu1 %v2317_v12 }
 0x5ca   : > { %v1143_v6 = vpop.f32.mrf.mxu1 }
 0x5cb   : > { %v2306_v6 = vld [vmem:[#allocation11 + $0x70] sm:$0xf0] }
 0x5cc   : > { %v2309_v56 = vor.u32 %v2558_v4, %v2306_v6  ;;  %v1217_v4 = vld [vmem:[%s3564_s9] sm:$0xf] }
 0x5cd   : > { %v1219_v11 = vperm.slane %v1217_v4, 0  ;;  %v1220_v12 = vperm.slane %v1217_v4, 1 }
 0x5ce   : > { %1404 = vmatpush.bf16.msra.mxu3 %v2309_v56  ;;  %v2609_v56 = vld [vmem:[#allocation13 + $0xf8] sm:$0xff] }
 0x5d2   : > { %1405 = vmatpush.bf16.msra.mxu3 %v2293_v19 }
 0x5d6   : > { %1406 = vmatpush.bf16.msra.mxu3 %v2277_v33 }
 0x5da   : > { %1407 = vmatpush.bf16.msra.mxu3 %v2261_v43 }
 0x63a   : > { %v1150_v24 = vpop.xlane.xlu2 %1149 }
 0x63b   : > { %v1158_v25 = vmul.f32 %v3381_v23, %v1150_v24  ;;  %v2301_v24 = vor.u32 %v2555_v21, %v2298_v22  ;;  %v2585_v22 = vld [vmem:[#allocation13 + $0x38] sm:$0xff] }
 0x63d   : > { %v3384_v26 = vsub.f32 %v1146_v5, %v1158_v25  ;;  %v2305_v5 = vor.u32 %v2560_v3, %v2304_v1  ;;  %v2272_v25 = vld [vmem:[#allocation11 + $0x20] sm:$0xf]  ;;  %1431 = vmatpush.bf16.msra.mxu1 %v2301_v24  ;;  %v2593_v24 = vld [vmem:[#allocation13 + $0x78] sm:$0xff] }
 0x63e   : > { %1876 = vmatpush.bf16.msrb.mxu3 %v2593_v24 }
 0x63f   : > { %v1160_v27 = vmul.f32 %v3384_v26, %v3384_v26  ;;  %1391 = vmatpush.bf16.msrb.mxu2 %v2305_v5  ;;  %v1221_v5 = vperm.slane %v1217_v4, 2 }
 0x641   : > { %1161 = vadd.xlane.f32.xlu0 %v1160_v27  ;;  %v2552_v27 = vld [vmem:[#allocation11 + $0x2c] sm:$0xf0]  ;;  %1432 = vmatpush.bf16.msra.mxu1 %v2285_v38 }
 0x642   : > { %v2273_v29 = vor.u32 %v2552_v27, %v2272_v25  ;;  %v2592_v38 = vld [vmem:[#allocation13 + $0x70] sm:$0xff] }
 0x643   : > { %1392 = vmatpush.bf16.msrb.mxu2 %v2289_v16  ;;  %v2608_v16 = vld [vmem:[#allocation13 + $0xf0] sm:$0xff]  ;;  %1877 = vmatpush.bf16.msrb.mxu3 %v2592_v38 }
 0x645   : > { %1433 = vmatpush.bf16.msra.mxu1 %v2269_v49  ;;  %v2597_v49 = vld [vmem:[#allocation13 + $0x98] sm:$0xff] }
 0x646   : > { %1893 = vmatpush.bf16.msra.mxu0 %v2597_v49 }
 0x647   : > { %1393 = vmatpush.bf16.msrb.mxu2 %v2273_v29  ;;  %1878 = vmatpush.bf16.msrb.mxu3 %v2591_v46 }
 0x649   : > { %1902 = vmatpush.bf16.msrb.mxu1 %v2609_v56 }
 0x64b   : > { %1394 = vmatpush.bf16.msrb.mxu2 %v2257_v42 }
 0x64d   : > { %1903 = vmatpush.bf16.msrb.mxu1 %v2608_v16  ;;  %v2595_v16 = vld [vmem:[#allocation13 + $0x88] sm:$0xff] }
 0x64f   : > { %1863 = vmatpush.bf16.msra.mxu2 %v2585_v22 }
 0x651   : > { %1904 = vmatpush.bf16.msrb.mxu1 %v2607_v35 }
 0x653   : > { %1864 = vmatpush.bf16.msra.mxu2 %v2584_v37 }
 0x655   : > { %1905 = vmatpush.bf16.msrb.mxu1 %v2606_v41  ;;  %v2602_v41 = vld [vmem:[#allocation13 + $0xc0] sm:$0xff] }
 0x657   : > { %1865 = vmatpush.bf16.msra.mxu2 %v2583_v45 }
 0x6b4   : > { %v1162_v50 = vpop.xlane.xlu0 %1161 }
 0x6b5   : > { %v1163_v51 = vmul.f32 %v1162_v50, %v3381_v23  ;;  %v2605_v50 = vld [vmem:[#allocation13 + $0xd8] sm:$0xff] }
 0x6b6   : > { %1906 = vmatpush.bf16.msrb.mxu1 %v2605_v50  ;;  %v2579_v50 = vld [vmem:[#allocation13 + $0x8] sm:$0xff] }
 0x6b7   : > { %v1164_v52 = vadd.f32 1e-12, %v1163_v51 }
 0x6b9   : > { %2747 = vrsqrt.f32 %v1164_v52  ;;  %vm1171_vm7 = vweird.f32 %v1164_v52 }
 0x6bf   : > { %v2748_v53 = vpop.eup %2747 }
 0x6c0   : > { %v1166_v54 = vmul.f32 %v2748_v53, %v1164_v52  ;;  %vm1172_vm6 = vweird.f32 %v2748_v53 }
 0x6c1   : > { %vm1173_vm8 = vmor %vm1171_vm7, %vm1172_vm6 }
 0x6c2   : > { %v1167_v55 = vmul.f32 %v2748_v53, %v1166_v54  ;;  %v2582_v54 = vld [vmem:[#allocation13 + $0x20] sm:$0xff] }
 0x6c3   : > { %1866 = vmatpush.bf16.msra.mxu2 %v2582_v54 }
 0x6c4   : > { %v1168_v57 = vmul.f32 0.5, %v1167_v55  ;;  %v2590_v55 = vld [vmem:[#allocation13 + $0x60] sm:$0xff] }
 0x6c5   : > { %1879 = vmatpush.bf16.msrb.mxu3 %v2590_v55 }
 0x6c6   : > { %v1169_v58 = vsub.f32 1.5, %v1168_v57 }
 0x6c8   : > { %v1170_v59 = vmul.f32 %v2748_v53, %v1169_v58 }
 0x6ca   : > { %v1174_v61 = vsel %vm1173_vm8, %v2748_v53, %v1170_v59 }
 0x6cb   : > { %v1175_v62 = vmul.f32 %v1174_v61, %v3384_v26  ;;  %v1222_v26 = vperm.slane %v1217_v4, 3  ;;  %v2596_v61 = vld [vmem:[#allocation13 + $0x90] sm:$0xff] }
 0x6cc   : > { %1894 = vmatpush.bf16.msra.mxu0 %v2596_v61 }
 0x6cd   : > { %v1179_v0 = vmul.f32 %v2724_v60, %v1175_v62  ;;  %v2604_v62 = vld [vmem:[#allocation13 + $0xd0] sm:$0xff] }
 0x6ce   : > { %1907 = vmatpush.bf16.msrb.mxu1 %v2604_v62 }
 0x6cf   : > { %v3396_v1 = vadd.f32 %v2725_v63, %v1179_v0 }
 0x6d0   : > { %1895 = vmatpush.bf16.msra.mxu0 %v2595_v16 }
 0x6d1   : > { %v1184_v3 = vpack.c.bf16 %v3396_v1, %v3396_v1 }
 0x6d3   : > { %1395 = vmatmul.bf16.vlgmr.msrb.gmra.mxu2 %v1184_v3  ;;  %1408 = vmatmul.bf16.vlgmr.msra.gmra.mxu3 %v1184_v3 }
 0x6d4   : > { %1421 = vmatmul.bf16.vlgmr.msrb.gmra.mxu0 %v1184_v3  ;;  %1434 = vmatmul.bf16.vlgmr.msra.gmra.mxu1 %v1184_v3 }
 0x6d5   : > { %1896 = vmatpush.bf16.msra.mxu0 %v2594_v40 }
 0x751   : > { %v1422_v6 = vpop.f32.mrf.mxu0  ;;  %v1435_v7 = vpop.f32.mrf.mxu1 }
 0x752   : > { %v3403_v9 = vadd.f32 %v1422_v6, %v1221_v5  ;;  %v3405_v10 = vadd.f32 %v1435_v7, %v1222_v26  ;;  %v2581_v6 = vld [vmem:[#allocation13 + $0x18] sm:$0xff] }
 0x753   : > { %v2589_v7 = vld [vmem:[#allocation13 + $0x58] sm:$0xff]  ;;  %1867 = vmatpush.bf16.msra.mxu2 %v2581_v6 }
 0x754   : > { %v3408_v13 = vmul.f32 0.70710677, %v3403_v9  ;;  %v3411_v14 = vmul.f32 0.70710677, %v3405_v10  ;;  %1880 = vmatpush.bf16.msrb.mxu3 %v2589_v7 }
 0x756   : > { %v3414_v17 = vand.u32 2147483647, %v3408_v13  ;;  %v3417_v2 = vand.u32 2147483647, %v3411_v14  ;;  %v1396_v18 = vpop.f32.mrf.mxu2  ;;  %v1409_v19 = vpop.f32.mrf.mxu3 }
 0x757   : > { %v3419_v20 = vadd.f32 %v1396_v18, %v1219_v11  ;;  %v3421_v21 = vadd.f32 %v1409_v19, %v1220_v12  ;;  %v2603_v18 = vld [vmem:[#allocation13 + $0xc8] sm:$0xff] }
 0x758   : > { %v1461_v25 = vmul.f32 0.3275911, %v3414_v17  ;;  %v1462_v27 = vmul.f32 0.3275911, %v3417_v2  ;;  %v1565_v59 = vsub.f32 0.0, %v3414_v17  ;;  %v1566_v15 = vsub.f32 0.0, %v3417_v2  ;;  %1908 = vmatpush.bf16.msrb.mxu1 %v2603_v18 }
 0x759   : > { %v3426_v28 = vmul.f32 0.70710677, %v3419_v20  ;;  %v3429_v29 = vmul.f32 0.70710677, %v3421_v21  ;;  %v1424_v30 = vpop.f32.mrf.mxu0  ;;  %v1437_v31 = vpop.f32.mrf.mxu1 }
 0x75a   : > { %v3431_v32 = vadd.f32 1.0, %v1461_v25  ;;  %v3433_v33 = vadd.f32 1.0, %v1462_v27  ;;  %v1569_v12 = vmul.f32 %v1565_v59, %v3414_v17  ;;  %v2580_v27 = vld [vmem:[#allocation13 + $0x10] sm:$0xff] }
 0x75b   : > { %v3436_v36 = vand.u32 2147483647, %v3426_v28  ;;  %v3441_v39 = vand.u32 2147483647, %v3429_v29  ;;  %v2588_v30 = vld [vmem:[#allocation13 + $0x50] sm:$0xff]  ;;  %1868 = vmatpush.bf16.msra.mxu2 %v2580_v27 }
 0x75c   : > { %2749 = vrcp.f32 %v3431_v32  ;;  %v1506_v63 = vand.u32 2147483647, %v3431_v32  ;;  %v1508_v0 = vand.u32 2147483648, %v3431_v32  ;;  %v1521_v5 = vand.u32 2147483647, %v3433_v33  ;;  %1881 = vmatpush.bf16.msrb.mxu3 %v2588_v30  ;;  %1909 = vmatpush.bf16.msrb.mxu1 %v2602_v41 }
 0x75d   : > { %2751 = vrcp.f32 %v3433_v33  ;;  %v1459_v44 = vmul.f32 0.3275911, %v3436_v36  ;;  %v1460_v48 = vmul.f32 0.3275911, %v3441_v39  ;;  %v1523_v26 = vand.u32 2147483648, %v3433_v33 }
 0x75e   : > { %v1398_v42 = vpop.f32.mrf.mxu2  ;;  %v1411_v43 = vpop.f32.mrf.mxu3  ;;  %vm1502_vm11 = vweird.f32 %v3431_v32  ;;  %v1509_v19 = vor.u32 1.1754944e-38, %v1508_v0  ;;  %vm1517_vm13 = vweird.f32 %v3433_v33  ;;  %vm1507_vm14 = vcmp.eq.f32.partialorder %v1506_v63, 8.507059e+37 }
 0x75f   : > { %v3444_v47 = vadd.f32 1.0, %v1459_v44  ;;  %v3451_v60 = vadd.f32 1.0, %v1460_v48  ;;  %vm1522_vm0 = vcmp.eq.f32.partialorder %v1521_v5, 8.507059e+37  ;;  %v1524_v17 = vor.u32 1.1754944e-38, %v1523_v26  ;;  %1869 = vmatpush.bf16.msra.mxu2 %v2579_v50 }
 0x760   : > { %v1575_v46 = vmul.f32 1.442695, %v1569_v12  ;;  %v1570_v48 = vmul.f32 %v1566_v15, %v3417_v2  ;;  %v1563_v54 = vsub.f32 0.0, %v3436_v36 }
 0x761   : > { %2753 = vrcp.f32 %v3444_v47  ;;  %v1476_v35 = vand.u32 2147483647, %v3444_v47  ;;  %v1478_v38 = vand.u32 2147483648, %v3444_v47  ;;  %vm1472_vm2 = vweird.f32 %v3444_v47 }
 0x762   : > { %v2750_v51 = vpop.eup %2749  ;;  %2755 = vrcp.f32 %v3451_v60  ;;  %v1491_v61 = vand.u32 2147483647, %v3451_v60  ;;  %v1577_v7 = vmul.f32 1.442695, %v1570_v48  ;;  %vm1487_vm6 = vweird.f32 %v3451_v60 }
 0x763   : > { %v2752_v52 = vpop.eup %2751  ;;  %v1498_v53 = vmul.f32 %v2750_v51, %v3431_v32  ;;  %vm1503_vm9 = vweird.f32 %v2750_v51  ;;  %vm1477_vm4 = vcmp.eq.f32.partialorder %v1476_v35, 8.507059e+37  ;;  %v1479_v2 = vor.u32 1.1754944e-38, %v1478_v38 }
 0x764   : > { %v1513_v57 = vmul.f32 %v2752_v52, %v3433_v33  ;;  %vm1518_vm10 = vweird.f32 %v2752_v52  ;;  %vm1504_vm12 = vmor %vm1502_vm11, %vm1503_vm9  ;;  %2757 = vpow2.f32 %v1575_v46  ;;  %v1567_v16 = vmul.f32 %v1563_v54, %v3436_v36 }
 0x765   : > { %v1499_v58 = vsub.f32 1.0, %v1498_v53  ;;  %vm1519_vm15 = vmor %vm1517_vm13, %vm1518_vm10  ;;  %vm1492_vm8 = vcmp.eq.f32.partialorder %v1491_v61, 8.507059e+37  ;;  %2759 = vpow2.f32 %v1577_v7  ;;  %vm1449_vm9 = vcmp.ge.f32.partialorder %v3408_v13, 0.0 }
 0x766   : > { %v1514_v3 = vsub.f32 1.0, %v1513_v57  ;;  %vm1450_vm10 = vcmp.ge.f32.partialorder %v3411_v14, 0.0  ;;  %v1441_v61 = vmul.f32 0.5, %v3403_v9  ;;  %vm1447_vm11 = vcmp.ge.f32.partialorder %v3426_v28, 0.0 }
 0x767   : > { %v1500_v4 = vmul.f32 %v2750_v51, %v1499_v58  ;;  %v3458_v56 = vpop.eup %2753 }
 0x768   : > { %v1515_v8 = vmul.f32 %v2752_v52, %v1514_v3  ;;  %v1468_v24 = vmul.f32 %v3458_v56, %v3444_v47  ;;  %v2756_v42 = vpop.eup %2755  ;;  %vm1473_vm1 = vweird.f32 %v3458_v56  ;;  %v1493_v47 = vand.u32 2147483648, %v3451_v60  ;;  %v2578_v3 = vld [vmem:[#allocation13] sm:$0xff] }
 0x769   : > { %v1501_v11 = vadd.f32 %v2750_v51, %v1500_v4  ;;  %v1483_v49 = vmul.f32 %v2756_v42, %v3451_v60  ;;  %vm1474_vm3 = vmor %vm1472_vm2, %vm1473_vm1  ;;  %vm1488_vm5 = vweird.f32 %v2756_v42  ;;  %v2586_v4 = vld [vmem:[#allocation13 + $0x40] sm:$0xff]  ;;  %1870 = vmatpush.bf16.msra.mxu2 %v2578_v3 }
 0x76a   : > { %v1516_v22 = vadd.f32 %v2752_v52, %v1515_v8  ;;  %v1469_v34 = vsub.f32 1.0, %v1468_v24  ;;  %vm1489_vm7 = vmor %vm1487_vm6, %vm1488_vm5  ;;  %v1494_v12 = vor.u32 1.1754944e-38, %v1493_v47 }
 0x76b   : > { %v1505_v25 = vsel %vm1504_vm12, %v2750_v51, %v1501_v11  ;;  %v2587_v51 = vld [vmem:[#allocation13 + $0x48] sm:$0xff]  ;;  %v1484_v57 = vsub.f32 1.0, %v1483_v49  ;;  %vm1448_vm12 = vcmp.ge.f32.partialorder %v3429_v29, 0.0 }
 0x76c   : > { %v3468_v31 = vsel %vm1507_vm14, %v1509_v19, %v1505_v25  ;;  %v1520_v32 = vsel %vm1519_vm15, %v2752_v52, %v1516_v22  ;;  %v1470_v44 = vmul.f32 %v3458_v56, %v1469_v34  ;;  %1882 = vmatpush.bf16.msrb.mxu3 %v2587_v51  ;;  %v1564_v25 = vsub.f32 0.0, %v3441_v39 }
 0x76d   : > { %v1529_v33 = vmul.f32 1.0614054, %v3468_v31  ;;  %v3472_v37 = vsel %vm1522_vm0, %v1524_v17, %v1520_v32  ;;  %v1485_v0 = vmul.f32 %v2756_v42, %v1484_v57  ;;  %v1571_v34 = vmul.f32 1.442695, %v1567_v16 }
 0x76e   : > { %v1530_v43 = vmul.f32 1.0614054, %v3472_v37  ;;  %v1471_v53 = vadd.f32 %v3458_v56, %v1470_v44  ;;  %v1568_v40 = vmul.f32 %v1564_v25, %v3441_v39  ;;  %v3076_v39 = vmov -1.0  }
 0x76f   : > { %v1533_v45 = vadd.f32 -1.4531521, %v1529_v33  ;;  %v1486_v8 = vadd.f32 %v2756_v42, %v1485_v0  ;;  %v2758_v33 = vpop.eup %2757  ;;  %2761 = vpow2.f32 %v1571_v34  ;;  %v1453_v54 = vsel %vm1449_vm9, 1.0, %v3076_v39 }
 0x770   : > { %v1534_v52 = vadd.f32 -1.4531521, %v1530_v43  ;;  %v1475_v59 = vsel %vm1474_vm3, %v3458_v56, %v1471_v53  ;;  %1883 = vmatpush.bf16.msrb.mxu3 %v2586_v4  ;;  %v1573_v51 = vmul.f32 1.442695, %v1568_v40  ;;  %v1440_v25 = vmul.f32 0.5, %v3421_v21 }
 0x771   : > { %v1537_v55 = vmul.f32 %v1533_v45, %v3468_v31  ;;  %v1480_v63 = vsel %vm1477_vm4, %v1479_v2, %v1475_v59  ;;  %v1490_v18 = vsel %vm1489_vm7, %v2756_v42, %v1486_v8  ;;  %v2760_v45 = vpop.eup %2759  ;;  %v1451_v8 = vsel %vm1447_vm11, 1.0, %v3076_v39 }
 0x772   : > { %v1538_v58 = vmul.f32 %v1534_v52, %v3472_v37  ;;  %v1527_v26 = vmul.f32 1.0614054, %v1480_v63  ;;  %v1495_v24 = vsel %vm1492_vm8, %v1494_v12, %v1490_v18  ;;  %2763 = vpow2.f32 %v1573_v51 }
 0x773   : > { %v1541_v62 = vadd.f32 1.4214138, %v1537_v55  ;;  %v1528_v17 = vmul.f32 1.0614054, %v1495_v24  ;;  %v1452_v18 = vsel %vm1448_vm12, 1.0, %v3076_v39 }
 0x774   : > { %v1542_v5 = vadd.f32 1.4214138, %v1538_v58  ;;  %v1531_v11 = vadd.f32 -1.4531521, %v1527_v26 }
 0x775   : > { %v1545_v6 = vmul.f32 %v1541_v62, %v3468_v31  ;;  %v1532_v35 = vadd.f32 -1.4531521, %v1528_v17  ;;  %v2762_v13 = vpop.eup %2761  ;;  %v1442_v62 = vmul.f32 0.5, %v3405_v10  ;;  %v1439_v10 = vmul.f32 0.5, %v3419_v20  ;;  %v2726_v20 = vld [vmem:[%s3566_s11] ss:$0 sm:$0xff] }
 0x776   : > { %v1546_v56 = vmul.f32 %v1542_v5, %v3472_v37  ;;  %v1535_v22 = vmul.f32 %v1531_v11, %v1480_v63 }
 0x777   : > { %v1549_v15 = vadd.f32 -0.28449672, %v1545_v6  ;;  %v1536_v42 = vmul.f32 %v1532_v35, %v1495_v24 }
 0x778   : > { %v1550_v19 = vadd.f32 -0.28449672, %v1546_v56  ;;  %v1539_v30 = vadd.f32 1.4214138, %v1535_v22 }
 0x779   : > { %v1553_v60 = vmul.f32 %v1549_v15, %v3468_v31  ;;  %v1540_v48 = vadd.f32 1.4214138, %v1536_v42 }
 0x77a   : > { %v1554_v27 = vmul.f32 %v1550_v19, %v3472_v37  ;;  %v1543_v36 = vmul.f32 %v1539_v30, %v1480_v63 }
 0x77b   : > { %v1557_v32 = vadd.f32 0.2548296, %v1553_v60  ;;  %v1544_v53 = vmul.f32 %v1540_v48, %v1495_v24 }
 0x77c   : > { %v1558_v38 = vadd.f32 0.2548296, %v1554_v27  ;;  %v1547_v44 = vadd.f32 -0.28449672, %v1543_v36 }
 0x77d   : > { %v1561_v41 = vmul.f32 %v1557_v32, %v3468_v31  ;;  %v1548_v57 = vadd.f32 -0.28449672, %v1544_v53 }
 0x77e   : > { %v1562_v43 = vmul.f32 %v1558_v38, %v3472_v37  ;;  %v1551_v50 = vmul.f32 %v1547_v44, %v1480_v63  ;;  %v1454_v37 = vsel %vm1450_vm10, 1.0, %v3076_v39 }
 0x77f   : > { %v1581_v46 = vmul.f32 %v2758_v33, %v1561_v41  ;;  %v1552_v14 = vmul.f32 %v1548_v57, %v1495_v24 }
 0x780   : > { %v1582_v49 = vmul.f32 %v2760_v45, %v1562_v43  ;;  %v1555_v55 = vadd.f32 0.2548296, %v1551_v50 }
 0x781   : > { %v1585_v52 = vsub.f32 1.0, %v1581_v46  ;;  %v1556_v5 = vadd.f32 0.2548296, %v1552_v14 }
 0x782   : > { %v1586_v31 = vsub.f32 1.0, %v1582_v49  ;;  %v1559_v59 = vmul.f32 %v1555_v55, %v1480_v63  ;;  %v2764_v63 = vpop.eup %2763 }
 0x783   : > { %v1589_v2 = vmul.f32 %v1585_v52, %v1453_v54  ;;  %v1560_v56 = vmul.f32 %v1556_v5, %v1495_v24 }
 0x784   : > { %v1590_v58 = vmul.f32 %v1586_v31, %v1454_v37  ;;  %v1579_v3 = vmul.f32 %v2762_v13, %v1559_v59  ;;  %v2727_v31 = vld [vmem:[%s3601_s21] ss:$0 sm:$0xff] }
 0x785   : > { %v1593_v47 = vadd.f32 1.0, %v1589_v2  ;;  %v1580_v9 = vmul.f32 %v2764_v63, %v1560_v56  ;;  %v2728_v2 = vld [vmem:[%s3602_s17] ss:$0 sm:$0xff] }
 0x786   : > { %v1594_v0 = vadd.f32 1.0, %v1590_v58  ;;  %v1583_v6 = vsub.f32 1.0, %v1579_v3 }
 0x787   : > { %v1597_v4 = vmul.f32 %v1593_v47, %v1441_v61  ;;  %v1584_v28 = vsub.f32 1.0, %v1580_v9 }
 0x788   : > { %v1598_v26 = vmul.f32 %v1594_v0, %v1442_v62  ;;  %v1587_v12 = vmul.f32 %v1583_v6, %v1451_v8 }
 0x789   : > { %v1601_v7 = vpack.c.bf16 %v1597_v4, %v1597_v4  ;;  %v1588_v19 = vmul.f32 %v1584_v28, %v1452_v18 }
 0x78a   : > { %v1602_v11 = vpack.c.bf16 %v1598_v26, %v1598_v26  ;;  %v1591_v15 = vadd.f32 1.0, %v1587_v12 }
 0x78b   : > { %1897 = vmatmul.bf16.vlgmr.msra.gmra.mxu0 %v1601_v7  ;;  %v1592_v60 = vadd.f32 1.0, %v1588_v19 }
 0x78c   : > { %1910 = vmatmul.bf16.vlgmr.msrb.gmra.mxu1 %v1602_v11  ;;  %v1595_v16 = vmul.f32 %v1591_v15, %v1439_v10 }
 0x78d   : > { %v1596_v24 = vmul.f32 %v1592_v60, %v1440_v25 }
 0x78e   : > { %v1599_v22 = vpack.c.bf16 %v1595_v16, %v1595_v16 }
 0x78f   : > { %v1600_v17 = vpack.c.bf16 %v1596_v24, %v1596_v24 }
 0x790   : > { %1871 = vmatmul.bf16.vlgmr.msra.gmra.mxu2 %v1599_v22 }
 0x791   : > { %1884 = vmatmul.bf16.vlgmr.msrb.gmra.mxu3 %v1600_v17 }
 0x808   : > { %v1898_v27 = vpop.f32.mrf.mxu0 }
 0x809   : > { %v1911_v29 = vpop.f32.mrf.mxu1 }
 0x810   : > { %v1900_v30 = vpop.f32.mrf.mxu0 }
 0x811   : > { %v1913_v32 = vpop.f32.mrf.mxu1 }
 0x813   : > { %v1872_v34 = vpop.f32.mrf.mxu2 }
 0x814   : > { %v1873_v35 = vadd.f32 %v2726_v20, %v1872_v34  ;;  %v1885_v33 = vpop.f32.mrf.mxu3 }
 0x816   : > { %v1886_v38 = vadd.f32 %v1885_v33, %v1873_v35 }
 0x818   : > { %v1899_v36 = vadd.f32 %v1898_v27, %v1886_v38 }
 0x81a   : > { %v1912_v21 = vadd.f32 %v1911_v29, %v1899_v36 }
 0x81b   : > { %v1874_v40 = vpop.f32.mrf.mxu2 }
 0x81c   : > { %v1915_v41 = vadd.f32 %v1912_v21, %v3396_v1  ;;  %v1887_v42 = vpop.f32.mrf.mxu3 }
 0x81e   : > { %1918 = vadd.xlane.f32.xlu1 %v1915_v41 }
 0x891   : > { %v1919_v43 = vpop.xlane.xlu1 %1918 }
 0x892   : > { %v1920_v44 = vmul.f32 %v1919_v43, %v3381_v23 }
 0x894   : > { %v1921_v45 = vsub.f32 %v1915_v41, %v1920_v44 }
 0x896   : > { %v1922_v46 = vmul.f32 %v1921_v45, %v1921_v45 }
 0x898   : > { %1923 = vadd.xlane.f32.xlu2 %v1922_v46 }
 0x90b   : > { %v1924_v48 = vpop.xlane.xlu2 %1923 }
 0x90c   : > { %v1925_v49 = vmul.f32 %v1924_v48, %v3381_v23 }
 0x90e   : > { %v1926_v50 = vadd.f32 1e-12, %v1925_v49 }
 0x910   : > { %2765 = vrsqrt.f32 %v1926_v50  ;;  %vm1933_vm14 = vweird.f32 %v1926_v50 }
 0x916   : > { %v2766_v51 = vpop.eup %2765 }
 0x917   : > { %v1928_v52 = vmul.f32 %v2766_v51, %v1926_v50  ;;  %vm1934_vm13 = vweird.f32 %v2766_v51 }
 0x918   : > { %vm1935_vm15 = vmor %vm1933_vm14, %vm1934_vm13 }
 0x919   : > { %v1929_v53 = vmul.f32 %v2766_v51, %v1928_v52 }
 0x91b   : > { %v1930_v39 = vmul.f32 0.5, %v1929_v53 }
 0x91d   : > { %v1931_v1 = vsub.f32 1.5, %v1930_v39 }
 0x91f   : > { %v1932_v54 = vmul.f32 %v2766_v51, %v1931_v1 }
 0x921   : > { %v1936_v55 = vsel %vm1935_vm15, %v2766_v51, %v1932_v54 }
 0x922   : > { %v1937_v23 = vmul.f32 %v1936_v55, %v1921_v45 }
 0x924   : > { %v1941_v37 = vmul.f32 %v2727_v31, %v1937_v23 }
 0x926   : > { %v1945_v57 = vadd.f32 %v2728_v2, %v1941_v37 }
 0x928   : > { %v1946_v58 = vpack.c.bf16 %v1945_v57, %v1945_v57 }
 0x92a   : > { %1947 = vst [vmem:[%s599_s20] sm:$0xf] %v1946_v58 }
 0x92b   : > { %3004 = shalt.err (!%p3001_p10)
}
 0x92c   : > { %2634 = dma.vmem_to_hbm [thread:$0]  (%p3242_p0), %s1962_s13, 64, %s1964_s12, %s1949_s23  }
 0x92d PF: > { %s3605_s16 = sld [smem:[#allocation22_spill]]  ;;  %s1975_s21 = sand.u32 1, %s3047_s29  }
 0x92e   : > { %s1976_s3 = scalar_lea.sflag [#allocation4], %s1975_s21 }
 0x933   : > { %p3606_p11 = scmp.ge.s32.totalorder %s3605_s16, 2 }
 0x935   : > { %p2660_p5 = pnand %p3606_p11, %p3250_p6 }
 0x937   : > { %p2661_p12 = pneg %p2660_p5 }
 0x939   : > { %3042 = dma.done.wait (%p2661_p12), %s1976_s3, 64  }
 0x93a   : > { %3044 = vsyncadd (%p2661_p12), %s1976_s3, 4294967232  ;;  %s3607_s16 = sld [smem:[#allocation23_spill]]  ;;  %s3610_s29 = smov %s3051_s30 }
 0x93b   : > { %s3608_s27 = sld [smem:[#allocation21_spill]] }
 0x93c   : > { %s3609_s15 = sld [smem:[#allocation24_spill]] }
 0x940   : > { %p32_p2 = scmp.ge.s32.totalorder %s3607_s16, 4  }
 0x941   : > { %s3611_s30 = smov %s3608_s27 }
 0x942   :  { %34 = sbr.rel (!%p32_p2) target bundleno = 18 (0x12), region = 154 }
 0x947   :  { %1982 = vsyncpa [#allocation3], 1 }
 0x948   :  { %1984 = vsyncpa [#allocation3 + $0x1], 1 }
 0x949   :  { %1985 = vsyncpa [#allocation6], 1 }
 0x94a   :  { %1987 = vsyncpa [#allocation6 + $0x1], 1 }
 0x94b   :  { %1988 = vsyncpa [#allocation9], 1 }
 0x94c   :  { %1989 = vsyncpa [#allocation12], 1 }
 0x94d   :  { %1990 = vsyncpa [#allocation4], 1 }
 0x94e   :  { %1992 = vsyncpa [#allocation4 + $0x1], 1 }

</bundles_post_ra>
